<compile_context>
chip_gen: v7x
topology: tpu7x:2x2x1
jax: 0.10.0
libtpu: 0.0.40
codegen_flags: <defaults>
</compile_context>

<pallas_src>
import jax
import jax.numpy as jnp
from jax.experimental import pallas as pl
from jax.experimental.pallas import tpu as pltpu

FC1_DIMS = 128
FC2_DIMS = 128
_SUBLANE = 8


def _cdiv(a, b):
    return -(-a // b)


def _round_up(v, m):
    return _cdiv(v, m) * m


def _num_tensorcores():
    """Best-effort TC-per-chip count (2 on v7x / megacore chips, else 1)."""
    try:
        kind = jax.devices()[0].device_kind.lower()
        if "v7" in kind:
            return 2
        if "v4" in kind or ("v5" in kind and "lite" not in kind):
            return 2  # megacore chips: parallel grid axis shards across both TCs
    except Exception:
        pass
    return 1


def _mlp_kernel(x_ref, w1_ref, b1_ref, w2_ref, b2_ref, w3_ref, b3_ref, o_ref):
    # One batch tile of the full MLP: 3 MXU matmuls (f32 accumulate) + bias/ReLU
    # on the VPU.  Weights/biases are VMEM-resident (constant index_map).
    h1 = jnp.maximum(
        jnp.dot(x_ref[...], w1_ref[...], preferred_element_type=jnp.float32)
        + b1_ref[...], 0.0)
    h2 = jnp.maximum(
        jnp.dot(h1, w2_ref[...], preferred_element_type=jnp.float32)
        + b2_ref[...], 0.0)
    o_ref[...] = (
        jnp.dot(h2, w3_ref[...], preferred_element_type=jnp.float32) + b3_ref[...]
    )


def network_forward(x, params, *, block_b=2048):
    """3-layer MLP forward as a single Pallas TPU kernel, tiled over the batch.

    x: (B, obs_dim) float32
    params: w1 (obs_dim, 128), b1 (1, 128), w2 (128, 128), b2 (1, 128),
            w3 (128, n_actions), b3 (1, n_actions)   -- all float32
    returns: (B, n_actions) float32
    """
    w1, b1 = params["w1"], params["b1"]
    w2, b2 = params["w2"], params["b2"]
    w3, b3 = params["w3"], params["b3"]

    B, obs_dim = x.shape
    n_actions = w3.shape[1]

    # Generation-aware batch tiling: 1 block on single-TC chips, 2 on 2-TC chips,
    # more only when tiles would exceed block_b rows.  tb derived from B (not a
    # fixed 256) so row-padding waste stays < 8 rows per block.
    ncores = _num_tensorcores()
    n_blocks_target = max(ncores, _cdiv(B, block_b))
    tb = _round_up(_cdiv(B, n_blocks_target), _SUBLANE)
    n_blocks = _cdiv(B, tb)
    b_pad = n_blocks * tb

    x_p = jnp.pad(x, ((0, b_pad - B), (0, 0))) if b_pad != B else x

    row_spec = lambda shape: pl.BlockSpec(shape, lambda i: (i, 0))   # tiled over batch
    const_spec = lambda a: pl.BlockSpec(a.shape, lambda i: (0, 0))   # weights stay resident

    flops = 2 * b_pad * (obs_dim * FC1_DIMS + FC1_DIMS * FC2_DIMS
                         + FC2_DIMS * n_actions)
    bytes_accessed = (
        x_p.size * x_p.dtype.itemsize
        + sum(a.size * a.dtype.itemsize for a in (w1, b1, w2, b2, w3, b3))
        + b_pad * n_actions * 4
    )

    out_padded = pl.pallas_call(
        _mlp_kernel,
        out_shape=jax.ShapeDtypeStruct((b_pad, n_actions), jnp.float32),
        grid=(n_blocks,),
        in_specs=[
            row_spec((tb, obs_dim)),
            const_spec(w1), const_spec(b1),
            const_spec(w2), const_spec(b2),
            const_spec(w3), const_spec(b3),
        ],
        out_specs=row_spec((tb, n_actions)),
        compiler_params=pltpu.CompilerParams(
            dimension_semantics=("parallel",)),
        cost_estimate=pl.CostEstimate(
            flops=flops, transcendentals=0, bytes_accessed=bytes_accessed),
    )(x_p, w1, b1, w2, b2, w3, b3)

    return out_padded if b_pad == B else out_padded[:B]


def init_params(key, obs_dim, n_actions):
    """Mirror torch.nn.Linear init U(-1/sqrt(fan_in), 1/sqrt(fan_in)); all f32."""
    def linear(key, fan_in, fan_out):
        kw, kb = jax.random.split(key)
        bound = 1.0 / jnp.sqrt(jnp.float32(fan_in))
        w = jax.random.uniform(kw, (fan_in, fan_out), jnp.float32, -bound, bound)
        b = jax.random.uniform(kb, (1, fan_out), jnp.float32, -bound, bound)
        return w, b

    k1, k2, k3 = jax.random.split(key, 3)
    w1, b1 = linear(k1, obs_dim, FC1_DIMS)
    w2, b2 = linear(k2, FC1_DIMS, FC2_DIMS)
    w3, b3 = linear(k3, FC2_DIMS, n_actions)
    return dict(w1=w1, b1=b1, w2=w2, b2=b2, w3=w3, b3=b3)


def reference_forward(x, p):
    """Pure-JAX f32 reference."""
    h1 = jnp.maximum(jnp.dot(x, p["w1"], preferred_element_type=jnp.float32)
                     + p["b1"], 0.0)
    h2 = jnp.maximum(jnp.dot(h1, p["w2"], preferred_element_type=jnp.float32)
                     + p["b2"], 0.0)
    return jnp.dot(h2, p["w3"], preferred_element_type=jnp.float32) + p["b3"]


if __name__ == "__main__":
    key = jax.random.PRNGKey(0)
    k_params, k_x = jax.random.split(key)

    # Small synthetic env: observation_space.shape = (8,), action_space.n = 4.
    # Rollout steps folded into the batch so the MXU/pipeline engage.
    OBS_DIM = 8
    N_ACTIONS = 4
    BATCH = 512

    params = init_params(k_params, OBS_DIM, N_ACTIONS)
    x = jax.random.normal(k_x, (BATCH, OBS_DIM), jnp.float32)

    out = jax.block_until_ready(network_forward(x, params))
    ref = reference_forward(x, params)

    assert out.shape == (BATCH, N_ACTIONS)
    assert jnp.allclose(out, ref, atol=1e-3, rtol=1e-3), "mismatch vs JAX reference"

    # TODO(synk): Adam optimizer / MSELoss from the module are training-side state,
    # not part of the forward pass, so they are intentionally not implemented here.
    print("KERNEL_OK")
</pallas_src>

<mosaic_0001>
module attributes {stable_mosaic.version = 11 : i64} {
  func.func @_mlp_kernel(%arg0: i32, %arg1: memref<512x8xf32, #tpu.memory_space<vmem>>, %arg2: memref<8x128xf32, #tpu.memory_space<vmem>>, %arg3: memref<1x128xf32, #tpu.memory_space<vmem>>, %arg4: memref<128x128xf32, #tpu.memory_space<vmem>>, %arg5: memref<1x128xf32, #tpu.memory_space<vmem>>, %arg6: memref<128x4xf32, #tpu.memory_space<vmem>>, %arg7: memref<1x4xf32, #tpu.memory_space<vmem>>, %arg8: memref<512x4xf32, #tpu.memory_space<vmem>>) attributes {dimension_semantics = [#tpu.dimension_semantics<parallel>], iteration_bounds = array<i64: 1>, scalar_prefetch = 0 : i64, scratch_operands = 0 : i64, tpu.core_type = #tpu.core_type<tc>, window_params = [{transform_indices = @transform_0, window_bounds = array<i64: 512, 8>}, {pipeline_mode = #tpu.pipeline_mode<synchronous>, transform_indices = @transform_1, window_bounds = array<i64: 8, 128>}, {pipeline_mode = #tpu.pipeline_mode<synchronous>, transform_indices = @transform_2, window_bounds = array<i64: 1, 128>}, {pipeline_mode = #tpu.pipeline_mode<synchronous>, transform_indices = @transform_3, window_bounds = array<i64: 128, 128>}, {pipeline_mode = #tpu.pipeline_mode<synchronous>, transform_indices = @transform_4, window_bounds = array<i64: 1, 128>}, {pipeline_mode = #tpu.pipeline_mode<synchronous>, transform_indices = @transform_5, window_bounds = array<i64: 128, 4>}, {pipeline_mode = #tpu.pipeline_mode<synchronous>, transform_indices = @transform_6, window_bounds = array<i64: 1, 4>}, {transform_indices = @transform_7, window_bounds = array<i64: 512, 4>}]} {
    %c0 = arith.constant 0 : index
    %c0_0 = arith.constant 0 : index
    %0 = vector.load %arg1[%c0, %c0_0] : memref<512x8xf32, #tpu.memory_space<vmem>>, vector<512x8xf32>
    %c0_1 = arith.constant 0 : index
    %c0_2 = arith.constant 0 : index
    %1 = vector.load %arg2[%c0_1, %c0_2] : memref<8x128xf32, #tpu.memory_space<vmem>>, vector<8x128xf32>
    %cst = arith.constant dense<0.000000e+00> : vector<512x128xf32>
    %2 = tpu.matmul %0, %1, %cst {dimension_numbers = #tpu.dot_dimension_numbers<[1], [0], [0], [1], [0, 0, 1, 1], [], []>} : vector<512x8xf32>, vector<8x128xf32>, vector<512x128xf32> -> vector<512x128xf32>
    %c0_3 = arith.constant 0 : index
    %c0_4 = arith.constant 0 : index
    %3 = vector.load %arg3[%c0_3, %c0_4] : memref<1x128xf32, #tpu.memory_space<vmem>>, vector<1x128xf32>
    %4 = vector.broadcast %3 : vector<1x128xf32> to vector<512x128xf32>
    %5 = arith.addf %2, %4 : vector<512x128xf32>
    %cst_5 = arith.constant 0.000000e+00 : f32
    %6 = vector.broadcast %cst_5 : f32 to vector<512x128xf32>
    %7 = arith.maximumf %5, %6 : vector<512x128xf32>
    %c0_6 = arith.constant 0 : index
    %c0_7 = arith.constant 0 : index
    %8 = vector.load %arg4[%c0_6, %c0_7] : memref<128x128xf32, #tpu.memory_space<vmem>>, vector<128x128xf32>
    %cst_8 = arith.constant dense<0.000000e+00> : vector<512x128xf32>
    %9 = tpu.matmul %7, %8, %cst_8 {dimension_numbers = #tpu.dot_dimension_numbers<[1], [0], [0], [1], [0, 0, 1, 1], [], []>} : vector<512x128xf32>, vector<128x128xf32>, vector<512x128xf32> -> vector<512x128xf32>
    %c0_9 = arith.constant 0 : index
    %c0_10 = arith.constant 0 : index
    %10 = vector.load %arg5[%c0_9, %c0_10] : memref<1x128xf32, #tpu.memory_space<vmem>>, vector<1x128xf32>
    %11 = vector.broadcast %10 : vector<1x128xf32> to vector<512x128xf32>
    %12 = arith.addf %9, %11 : vector<512x128xf32>
    %cst_11 = arith.constant 0.000000e+00 : f32
    %13 = vector.broadcast %cst_11 : f32 to vector<512x128xf32>
    %14 = arith.maximumf %12, %13 : vector<512x128xf32>
    %c0_12 = arith.constant 0 : index
    %c0_13 = arith.constant 0 : index
    %15 = vector.load %arg6[%c0_12, %c0_13] : memref<128x4xf32, #tpu.memory_space<vmem>>, vector<128x4xf32>
    %cst_14 = arith.constant dense<0.000000e+00> : vector<512x4xf32>
    %16 = tpu.matmul %14, %15, %cst_14 {dimension_numbers = #tpu.dot_dimension_numbers<[1], [0], [0], [1], [0, 0, 1, 1], [], []>} : vector<512x128xf32>, vector<128x4xf32>, vector<512x4xf32> -> vector<512x4xf32>
    %c0_15 = arith.constant 0 : index
    %c0_16 = arith.constant 0 : index
    %17 = vector.load %arg7[%c0_15, %c0_16] : memref<1x4xf32, #tpu.memory_space<vmem>>, vector<1x4xf32>
    %18 = vector.broadcast %17 : vector<1x4xf32> to vector<512x4xf32>
    %19 = arith.addf %16, %18 : vector<512x4xf32>
    %c0_17 = arith.constant 0 : index
    %c0_18 = arith.constant 0 : index
    %20 = vector.load %arg8[%c0_17, %c0_18] : memref<512x4xf32, #tpu.memory_space<vmem>>, vector<512x4xf32>
    tpu.vector_store %arg8[%c0_17, %c0_18], %19 {strides = array<i32>} : memref<512x4xf32, #tpu.memory_space<vmem>>, vector<512x4xf32>,
    return
  }
  func.func @transform_0(%arg0: i32) -> (i32, i32) {
    %c0_i32 = arith.constant 0 : i32
    %c0_i32_0 = arith.constant 0 : i32
    return %arg0, %c0_i32 : i32, i32
  }
  func.func @transform_1(%arg0: i32) -> (i32, i32) {
    %c0_i32 = arith.constant 0 : i32
    %c0_i32_0 = arith.constant 0 : i32
    %c0_i32_1 = arith.constant 0 : i32
    return %c0_i32, %c0_i32_0 : i32, i32
  }
  func.func @transform_2(%arg0: i32) -> (i32, i32) {
    %c0_i32 = arith.constant 0 : i32
    %c0_i32_0 = arith.constant 0 : i32
    %c0_i32_1 = arith.constant 0 : i32
    return %c0_i32, %c0_i32_0 : i32, i32
  }
  func.func @transform_3(%arg0: i32) -> (i32, i32) {
    %c0_i32 = arith.constant 0 : i32
    %c0_i32_0 = arith.constant 0 : i32
    %c0_i32_1 = arith.constant 0 : i32
    return %c0_i32, %c0_i32_0 : i32, i32
  }
  func.func @transform_4(%arg0: i32) -> (i32, i32) {
    %c0_i32 = arith.constant 0 : i32
    %c0_i32_0 = arith.constant 0 : i32
    %c0_i32_1 = arith.constant 0 : i32
    return %c0_i32, %c0_i32_0 : i32, i32
  }
  func.func @transform_5(%arg0: i32) -> (i32, i32) {
    %c0_i32 = arith.constant 0 : i32
    %c0_i32_0 = arith.constant 0 : i32
    %c0_i32_1 = arith.constant 0 : i32
    return %c0_i32, %c0_i32_0 : i32, i32
  }
  func.func @transform_6(%arg0: i32) -> (i32, i32) {
    %c0_i32 = arith.constant 0 : i32
    %c0_i32_0 = arith.constant 0 : i32
    %c0_i32_1 = arith.constant 0 : i32
    return %c0_i32, %c0_i32_0 : i32, i32
  }
  func.func @transform_7(%arg0: i32) -> (i32, i32) {
    %c0_i32 = arith.constant 0 : i32
    %c0_i32_0 = arith.constant 0 : i32
    return %arg0, %c0_i32 : i32, i32
  }
}

</mosaic_0001>

<bundles_post_ra>
// kernel: tpu_custom_call.1
= control target key start
LH: loop header
LB: loop body
LE: loop exit
PB: predicated region body
PF: predicated region fallthrough
CT: control target
= control target key end

     0   :  { %vm98_vm0 = vcmask 64512   ;;  %vm1620_vm1 = vcmask 31744   ;;  %s3355_s1 = inlined_call_operand.vmem [shape: f32[8,128], index: 1, kind: input, shape index: {}]   ;;  %s3356_s0 = inlined_call_operand.vmem [shape: f32[512,8], index: 0, kind: input, shape index: {}]   ;;  %s3357_s3 = inlined_call_operand.vmem [shape: f32[128,128], index: 3, kind: input, shape index: {}]   ;;  %s3358_s2 = inlined_call_operand.vmem [shape: f32[1,128], index: 2, kind: input, shape index: {}]   ;;  %s3359_s5 = inlined_call_operand.vmem [shape: f32[128,4], index: 5, kind: input, shape index: {}]   ;;  %s3360_s4 = inlined_call_operand.vmem [shape: f32[1,128], index: 4, kind: input, shape index: {}]   ;;  %s3361_s6 = inlined_call_operand.vmem [shape: f32[1,4], index: 6, kind: input, shape index: {}]   ;;  %s3362_s7 = inlined_call_operand.vmem [shape: f32[512,4], index: 7, kind: output, shape index: {}]  }
   0x1   :  { %v90_v0 = vld [vmem:[%s3355_s1] sm:$0xff]  ;;  %v27_v2 = vld [vmem:[%s3356_s0 + $0x8] sm:$0xff]  ;;  %v28_v3 = vld [vmem:[%s3356_s0 + $0x10] sm:$0xff] }
   0x2   :  { %v26_v1 = vld [vmem:[%s3356_s0] sm:$0xff]  ;;  %1981 = vmatprep.subr.mxu0 %v90_v0  ;;  %2399 = vmatprep.subr.mxu1 %v90_v0  ;;  %v29_v4 = vld [vmem:[%s3356_s0 + $0x18] sm:$0xff]  ;;  %v31_v6 = vld [vmem:[%s3356_s0 + $0x28] sm:$0xff] }
   0x3   :  { %1983 = vmatprep.mubr.msk.f32.mxu0 %vm98_vm0, %v26_v1  ;;  %1982 = vmatpush3.msra.mxu0 %v90_v0  ;;  %v30_v5 = vld [vmem:[%s3356_s0 + $0x20] sm:$0xff]  ;;  %v32_v7 = vld [vmem:[%s3356_s0 + $0x30] sm:$0xff]  ;;  %v59_v9 = vld [vmem:[%s3356_s0 + $0x108] sm:$0xff] }
   0x4   :  { %1984 = vmatmul.mubr.msk.f32.vlgmr.msra.gmra.mrb[0].mxu0 %vm98_vm0, %v27_v2  ;;  %2400 = vmatpush3.msra.mxu1 %v90_v0  ;;  %v58_v8 = vld [vmem:[%s3356_s0 + $0x100] sm:$0xff]  ;;  %v60_v10 = vld [vmem:[%s3356_s0 + $0x110] sm:$0xff]  ;;  %v33_v11 = vld [vmem:[%s3356_s0 + $0x38] sm:$0xff] }
   0x5   :  { %1986 = vmatprep.mubr.msk.f32.mxu0 %vm98_vm0, %v28_v3  ;;  %2031 = vmatprep.mubr.msk.f32.mxu1 %vm98_vm0, %v58_v8  ;;  %v34_v12 = vld [vmem:[%s3356_s0 + $0x40] sm:$0xff]  ;;  %v61_v13 = vld [vmem:[%s3356_s0 + $0x118] sm:$0xff]  ;;  %v35_v15 = vld [vmem:[%s3356_s0 + $0x48] sm:$0xff] }
   0x6   :  { %2032 = vmatmul.mubr.msk.f32.vlgmr.msra.gmra.mrb[0].mxu1 %vm98_vm0, %v59_v9  ;;  %v62_v14 = vld [vmem:[%s3356_s0 + $0x120] sm:$0xff]  ;;  %v36_v16 = vld [vmem:[%s3356_s0 + $0x50] sm:$0xff]  ;;  %v63_v17 = vld [vmem:[%s3356_s0 + $0x128] sm:$0xff] }
   0x7   :  { %2034 = vmatprep.mubr.msk.f32.mxu1 %vm98_vm0, %v60_v10  ;;  %v64_v18 = vld [vmem:[%s3356_s0 + $0x130] sm:$0xff]  ;;  %v37_v19 = vld [vmem:[%s3356_s0 + $0x58] sm:$0xff]  ;;  %v38_v20 = vld [vmem:[%s3356_s0 + $0x60] sm:$0xff] }
   0x8   :  { %1987 = vmatmul.mubr.msk.f32.gmra.mrb[2].mxu0 %vm98_vm0, %v29_v4  ;;  %v65_v21 = vld [vmem:[%s3356_s0 + $0x138] sm:$0xff]  ;;  %v740_v22 = vld [vmem:[%s3357_s3] sm:$0xff]  ;;  %v741_v23 = vld [vmem:[%s3357_s3 + $0x8] sm:$0xff] }
   0x9   :  { %1989 = vmatprep.mubr.msk.f32.mxu0 %vm98_vm0, %v30_v5  ;;  %v742_v24 = vld [vmem:[%s3357_s3 + $0x10] sm:$0xff]  ;;  %v743_v25 = vld [vmem:[%s3357_s3 + $0x18] sm:$0xff]  ;;  %v66_v26 = vld [vmem:[%s3356_s0 + $0x140] sm:$0xff]  ;;  %v2335_v27 = vpack.c.bf16 %v741_v23, %v740_v22 }
   0xa   :  { %2035 = vmatmul.mubr.msk.f32.gmra.mrb[2].mxu1 %vm98_vm0, %v61_v13  ;;  %v2339_v28 = vpack.c.bf16 %v743_v25, %v742_v24  ;;  %v39_v29 = vld [vmem:[%s3356_s0 + $0x68] sm:$0xff]  ;;  %v744_v30 = vld [vmem:[%s3357_s3 + $0x20] sm:$0xff]  ;;  %v40_v32 = vld [vmem:[%s3356_s0 + $0x70] sm:$0xff] }
   0xb   :  { %2037 = vmatprep.mubr.msk.f32.mxu1 %vm98_vm0, %v62_v14  ;;  %v745_v31 = vld [vmem:[%s3357_s3 + $0x28] sm:$0xff]  ;;  %2336 = vmatprep.subr.bf16.mxu1 %v2335_v27  ;;  %v68_v34 = vld [vmem:[%s3356_s0 + $0x150] sm:$0xff]  ;;  %v41_v36 = vld [vmem:[%s3356_s0 + $0x78] sm:$0xff] }
   0xc   :  { %1990 = vmatmul.mubr.msk.f32.gmra.mrb[4].mxu0 %vm98_vm0, %v31_v6  ;;  %v67_v33 = vld [vmem:[%s3356_s0 + $0x148] sm:$0xff]  ;;  %2338 = vmatpush3.bf16.msra.mxu1 %v2335_v27  ;;  %v2343_v35 = vpack.c.bf16 %v745_v31, %v744_v30  ;;  %v746_v37 = vld [vmem:[%s3357_s3 + $0x30] sm:$0xff]  ;;  %v747_v38 = vld [vmem:[%s3357_s3 + $0x38] sm:$0xff] }
   0xd   :  { %1992 = vmatprep.mubr.msk.f32.mxu0 %vm98_vm0, %v32_v7  ;;  %2340 = vmatprep.subr.bf16.mxu1 %v2339_v28  ;;  %v42_v39 = vld [vmem:[%s3356_s0 + $0x80] sm:$0xff]  ;;  %v69_v40 = vld [vmem:[%s3356_s0 + $0x158] sm:$0xff]  ;;  %v2347_v42 = vpack.c.bf16 %v747_v38, %v746_v37  ;;  %v43_v43 = vld [vmem:[%s3356_s0 + $0x88] sm:$0xff] }
   0xe   :  { %2038 = vmatmul.mubr.msk.f32.gmra.mrb[4].mxu1 %vm98_vm0, %v63_v17  ;;  %v70_v41 = vld [vmem:[%s3356_s0 + $0x160] sm:$0xff]  ;;  %v749_v45 = vld [vmem:[%s3357_s3 + $0x48] sm:$0xff]  ;;  %v44_v46 = vld [vmem:[%s3356_s0 + $0x90] sm:$0xff] }
   0xf   :  { %2040 = vmatprep.mubr.msk.f32.mxu1 %vm98_vm0, %v64_v18  ;;  %v748_v44 = vld [vmem:[%s3357_s3 + $0x40] sm:$0xff]  ;;  %v71_v47 = vld [vmem:[%s3356_s0 + $0x168] sm:$0xff]  ;;  %v72_v48 = vld [vmem:[%s3356_s0 + $0x170] sm:$0xff] }
  0x10   :  { %1993 = vmatmul.mubr.msk.f32.gmra.mrb[6].mxu0 %vm98_vm0, %v33_v11  ;;  %2342 = vmatpush3.bf16.msra.mxu1 %v2339_v28  ;;  %v2351_v49 = vpack.c.bf16 %v749_v45, %v748_v44  ;;  %v45_v50 = vld [vmem:[%s3356_s0 + $0x98] sm:$0xff]  ;;  %v750_v51 = vld [vmem:[%s3357_s3 + $0x50] sm:$0xff]  ;;  %v46_v53 = vld [vmem:[%s3356_s0 + $0xa0] sm:$0xff] }
  0x11   :  { %1995 = vmatprep.mubr.msk.f32.mxu0 %vm98_vm0, %v34_v12  ;;  %2344 = vmatprep.subr.bf16.mxu1 %v2343_v35  ;;  %v751_v52 = vld [vmem:[%s3357_s3 + $0x58] sm:$0xff]  ;;  %v74_v55 = vld [vmem:[%s3356_s0 + $0x180] sm:$0xff]  ;;  %v47_v57 = vld [vmem:[%s3356_s0 + $0xa8] sm:$0xff] }
  0x12   :  { %2041 = vmatmul.mubr.msk.f32.gmra.mrb[6].mxu1 %vm98_vm0, %v65_v21  ;;  %v73_v54 = vld [vmem:[%s3356_s0 + $0x178] sm:$0xff]  ;;  %v2355_v56 = vpack.c.bf16 %v751_v52, %v750_v51  ;;  %v752_v58 = vld [vmem:[%s3357_s3 + $0x60] sm:$0xff]  ;;  %v753_v59 = vld [vmem:[%s3357_s3 + $0x68] sm:$0xff] }
  0x13   :  { %2043 = vmatprep.mubr.msk.f32.mxu1 %vm98_vm0, %v66_v26  ;;  %v48_v60 = vld [vmem:[%s3356_s0 + $0xb0] sm:$0xff]  ;;  %v75_v61 = vld [vmem:[%s3356_s0 + $0x188] sm:$0xff]  ;;  %v2359_v63 = vpack.c.bf16 %v753_v59, %v752_v58  ;;  %v49_v0 = vld [vmem:[%s3356_s0 + $0xb8] sm:$0xff] }
  0x14   :  { %1996 = vmatmul.mubr.msk.f32.gmra.mrb[8].mxu0 %vm98_vm0, %v35_v15  ;;  %2346 = vmatpush3.bf16.msra.mxu1 %v2343_v35  ;;  %v76_v62 = vld [vmem:[%s3356_s0 + $0x190] sm:$0xff]  ;;  %v755_v2 = vld [vmem:[%s3357_s3 + $0x78] sm:$0xff]  ;;  %v50_v3 = vld [vmem:[%s3356_s0 + $0xc0] sm:$0xff] }
  0x15   :  { %1998 = vmatprep.mubr.msk.f32.mxu0 %vm98_vm0, %v36_v16  ;;  %2348 = vmatprep.subr.bf16.mxu1 %v2347_v42  ;;  %v754_v1 = vld [vmem:[%s3357_s3 + $0x70] sm:$0xff]  ;;  %v77_v4 = vld [vmem:[%s3356_s0 + $0x198] sm:$0xff]  ;;  %v78_v5 = vld [vmem:[%s3356_s0 + $0x1a0] sm:$0xff] }
  0x16   :  { %2044 = vmatmul.mubr.msk.f32.gmra.mrb[8].mxu1 %vm98_vm0, %v67_v33  ;;  %v2363_v6 = vpack.c.bf16 %v755_v2, %v754_v1  ;;  %v51_v7 = vld [vmem:[%s3356_s0 + $0xc8] sm:$0xff]  ;;  %v52_v8 = vld [vmem:[%s3356_s0 + $0xd0] sm:$0xff]  ;;  %v53_v11 = vld [vmem:[%s3356_s0 + $0xd8] sm:$0xff] }
  0x17   :  { %2046 = vmatprep.mubr.msk.f32.mxu1 %vm98_vm0, %v68_v34  ;;  %v79_v9 = vld [vmem:[%s3356_s0 + $0x1a8] sm:$0xff]  ;;  %v80_v10 = vld [vmem:[%s3356_s0 + $0x1b0] sm:$0xff]  ;;  %v54_v12 = vld [vmem:[%s3356_s0 + $0xe0] sm:$0xff] }
  0x18   :  { %1999 = vmatmul.mubr.msk.f32.gmra.mrb[10].mxu0 %vm98_vm0, %v37_v19  ;;  %2350 = vmatpush3.bf16.msra.mxu1 %v2347_v42  ;;  %v81_v13 = vld [vmem:[%s3356_s0 + $0x1b8] sm:$0xff]  ;;  %v82_v14 = vld [vmem:[%s3356_s0 + $0x1c0] sm:$0xff]  ;;  %v55_v15 = vld [vmem:[%s3356_s0 + $0xe8] sm:$0xff] }
  0x19   :  { %2001 = vmatprep.mubr.msk.f32.mxu0 %vm98_vm0, %v38_v20  ;;  %2352 = vmatprep.subr.bf16.mxu1 %v2351_v49  ;;  %v56_v16 = vld [vmem:[%s3356_s0 + $0xf0] sm:$0xff]  ;;  %v83_v17 = vld [vmem:[%s3356_s0 + $0x1c8] sm:$0xff]  ;;  %v57_v19 = vld [vmem:[%s3356_s0 + $0xf8] sm:$0xff] }
  0x1a   :  { %2047 = vmatmul.mubr.msk.f32.gmra.mrb[10].mxu1 %vm98_vm0, %v69_v40  ;;  %v84_v18 = vld [vmem:[%s3356_s0 + $0x1d0] sm:$0xff]  ;;  %v85_v20 = vld [vmem:[%s3356_s0 + $0x1d8] sm:$0xff]  ;;  %v86_v21 = vld [vmem:[%s3356_s0 + $0x1e0] sm:$0xff] }
  0x1b   :  { %2049 = vmatprep.mubr.msk.f32.mxu1 %vm98_vm0, %v70_v41  ;;  %v87_v22 = vld [vmem:[%s3356_s0 + $0x1e8] sm:$0xff]  ;;  %v88_v23 = vld [vmem:[%s3356_s0 + $0x1f0] sm:$0xff]  ;;  %v89_v24 = vld [vmem:[%s3356_s0 + $0x1f8] sm:$0xff] }
  0x1c   :  { %2002 = vmatmul.mubr.msk.f32.gmra.mrb[12].mxu0 %vm98_vm0, %v39_v29  ;;  %2354 = vmatpush3.bf16.msra.mxu1 %v2351_v49  ;;  %v2751_v25 = vld [vmem:[%s3358_s2] ss:$0 sm:$0xff]  ;;  %v1213_v33 = vld [vmem:[%s3359_s5 + $0x8] sm:$0xff]  ;;  %v1214_v34 = vld [vmem:[%s3359_s5 + $0x10] sm:$0xff] }
  0x1d   :  { %2004 = vmatprep.mubr.msk.f32.mxu0 %vm98_vm0, %v40_v32  ;;  %2356 = vmatprep.subr.bf16.mxu1 %v2355_v56  ;;  %v1212_v32 = vld [vmem:[%s3359_s5] sm:$0xff]  ;;  %v1218_v52 = vld [vmem:[%s3359_s5 + $0x30] sm:$0xff] }
  0x1e   :  { %2050 = vmatmul.mubr.msk.f32.gmra.mrb[12].mxu1 %vm98_vm0, %v71_v47  ;;  %v2367_v38 = vpack.c.bf16 %v1213_v33, %v1212_v32  ;;  %v1216_v42 = vld [vmem:[%s3359_s5 + $0x20] sm:$0xff]  ;;  %v1226_v33 = vld [vmem:[%s3359_s5 + $0x70] sm:$0xff] }
  0x1f   :  { %2052 = vmatprep.mubr.msk.f32.mxu1 %vm98_vm0, %v72_v48 }
  0x20   :  { %2005 = vmatmul.mubr.msk.f32.gmra.mrb[14].mxu0 %vm98_vm0, %v41_v36  ;;  %2358 = vmatpush3.bf16.msra.mxu1 %v2355_v56 }
  0x21   :  { %2007 = vmatprep.mubr.msk.f32.mxu0 %vm98_vm0, %v42_v39  ;;  %2360 = vmatprep.subr.bf16.mxu1 %v2359_v63  ;;  %v1215_v39 = vld [vmem:[%s3359_s5 + $0x18] sm:$0xff] }
  0x22   :  { %2053 = vmatmul.mubr.msk.f32.gmra.mrb[14].mxu1 %vm98_vm0, %v73_v54  ;;  %v2371_v41 = vpack.c.bf16 %v1215_v39, %v1214_v34  ;;  %2368 = vmatprep.subr.bf16.mxu0 %v2367_v38  ;;  %v1227_v34 = vld [vmem:[%s3359_s5 + $0x78] sm:$0xff] }
  0x23   :  { %2055 = vmatprep.mubr.msk.f32.mxu1 %vm98_vm0, %v74_v55  ;;  %2370 = vmatpush3.bf16.msra.mxu0 %v2367_v38 }
  0x24   :  { %2008 = vmatmul.mubr.msk.f32.gmra.mrb[16].mxu0 %vm98_vm0, %v43_v43  ;;  %2362 = vmatpush3.bf16.msra.mxu1 %v2359_v63  ;;  %v1217_v43 = vld [vmem:[%s3359_s5 + $0x28] sm:$0xff]  ;;  %v1220_v63 = vld [vmem:[%s3359_s5 + $0x40] sm:$0xff] }
  0x25   :  { %2010 = vmatprep.mubr.msk.f32.mxu0 %vm98_vm0, %v44_v46  ;;  %2364 = vmatprep.subr.bf16.mxu1 %v2363_v6  ;;  %v2375_v49 = vpack.c.bf16 %v1217_v43, %v1216_v42 }
  0x26   :  { %2056 = vmatmul.mubr.msk.f32.gmra.mrb[16].mxu1 %vm98_vm0, %v75_v61  ;;  %2372 = vmatprep.subr.bf16.mxu0 %v2371_v41 }
  0x27   :  { %2058 = vmatprep.mubr.msk.f32.mxu1 %vm98_vm0, %v76_v62  ;;  %2374 = vmatpush3.bf16.msra.mxu0 %v2371_v41  ;;  %v2395_v41 = vpack.c.bf16 %v1227_v34, %v1226_v33 }
  0x28   :  { %2011 = vmatmul.mubr.msk.f32.gmra.mrb[18].mxu0 %vm98_vm0, %v45_v50  ;;  %2366 = vmatpush3.bf16.msra.mxu1 %v2363_v6 }
  0x29   :  { %2013 = vmatprep.mubr.msk.f32.mxu0 %vm98_vm0, %v46_v53  ;;  %v1219_v53 = vld [vmem:[%s3359_s5 + $0x38] sm:$0xff]  ;;  %2376 = vmatprep.subr.bf16.mxu0 %v2375_v49 }
  0x2a   :  { %2059 = vmatmul.mubr.msk.f32.gmra.mrb[18].mxu1 %vm98_vm0, %v77_v4 }
  0x2b   :  { %2061 = vmatprep.mubr.msk.f32.mxu1 %vm98_vm0, %v78_v5  ;;  %2378 = vmatpush3.bf16.msra.mxu0 %v2375_v49 }
  0x2c   :  { %2014 = vmatmul.mubr.msk.f32.gmra.mrb[20].mxu0 %vm98_vm0, %v47_v57 }
  0x2d   :  { %2016 = vmatprep.mubr.msk.f32.mxu0 %vm98_vm0, %v48_v60  ;;  %v2379_v60 = vpack.c.bf16 %v1219_v53, %v1218_v52 }
  0x2e   :  { %2062 = vmatmul.mubr.msk.f32.gmra.mrb[20].mxu1 %vm98_vm0, %v79_v9 }
  0x2f   :  { %2064 = vmatprep.mubr.msk.f32.mxu1 %vm98_vm0, %v80_v10  ;;  %2380 = vmatprep.subr.bf16.mxu0 %v2379_v60  ;;  %v1222_v10 = vld [vmem:[%s3359_s5 + $0x50] sm:$0xff] }
  0x30   :  { %2017 = vmatmul.mubr.msk.f32.gmra.mrb[22].mxu0 %vm98_vm0, %v49_v0  ;;  %v1221_v0 = vld [vmem:[%s3359_s5 + $0x48] sm:$0xff] }
  0x31   :  { %2019 = vmatprep.mubr.msk.f32.mxu0 %vm98_vm0, %v50_v3  ;;  %2382 = vmatpush3.bf16.msra.mxu0 %v2379_v60 }
  0x32   :  { %2065 = vmatmul.mubr.msk.f32.gmra.mrb[22].mxu1 %vm98_vm0, %v81_v13 }
  0x33   :  { %2067 = vmatprep.mubr.msk.f32.mxu1 %vm98_vm0, %v82_v14 }
  0x34   :  { %2020 = vmatmul.mubr.msk.f32.gmra.mrb[24].mxu0 %vm98_vm0, %v51_v7  ;;  %v2383_v7 = vpack.c.bf16 %v1221_v0, %v1220_v63 }
  0x35   :  { %2022 = vmatprep.mubr.msk.f32.mxu0 %vm98_vm0, %v52_v8 }
  0x36   :  { %2068 = vmatmul.mubr.msk.f32.gmra.mrb[24].mxu1 %vm98_vm0, %v83_v17  ;;  %2384 = vmatprep.subr.bf16.mxu0 %v2383_v7 }
  0x37   :  { %2070 = vmatprep.mubr.msk.f32.mxu1 %vm98_vm0, %v84_v18  ;;  %2386 = vmatpush3.bf16.msra.mxu0 %v2383_v7 }
  0x38   :  { %2023 = vmatmul.mubr.msk.f32.gmra.mrb[26].mxu0 %vm98_vm0, %v53_v11  ;;  %v1223_v11 = vld [vmem:[%s3359_s5 + $0x58] sm:$0xff] }
  0x39   :  { %2025 = vmatprep.mubr.msk.f32.mxu0 %vm98_vm0, %v54_v12  ;;  %v2387_v18 = vpack.c.bf16 %v1223_v11, %v1222_v10 }
  0x3a   :  { %2071 = vmatmul.mubr.msk.f32.gmra.mrb[26].mxu1 %vm98_vm0, %v85_v20 }
  0x3b   :  { %2073 = vmatprep.mubr.msk.f32.mxu1 %vm98_vm0, %v86_v21  ;;  %v1224_v21 = vld [vmem:[%s3359_s5 + $0x60] sm:$0xff]  ;;  %2388 = vmatprep.subr.bf16.mxu0 %v2387_v18 }
  0x3c   :  { %2026 = vmatmul.mubr.msk.f32.gmra.mrb[28].mxu0 %vm98_vm0, %v55_v15 }
  0x3d   :  { %2028 = vmatprep.mubr.msk.f32.mxu0 %vm98_vm0, %v56_v16  ;;  %2390 = vmatpush3.bf16.msra.mxu0 %v2387_v18 }
  0x3e   :  { %2074 = vmatmul.mubr.msk.f32.gmra.mrb[28].mxu1 %vm98_vm0, %v87_v22  ;;  %v1225_v22 = vld [vmem:[%s3359_s5 + $0x68] sm:$0xff] }
  0x3f   :  { %2076 = vmatprep.mubr.msk.f32.mxu1 %vm98_vm0, %v88_v23 }
  0x40   :  { %2029 = vmatmul.mubr.msk.f32.gmra.mrb[30].mxu0 %vm98_vm0, %v57_v19 }
  0x42   :  { %2077 = vmatmul.mubr.msk.f32.gmra.mrb[30].mxu1 %vm98_vm0, %v89_v24 }
  0xd7   :  { %v1985_v26 = vpop.f32.mrb[0].mxu0 }
  0xd8   :  { %v363_v27 = vadd.f32 %v1985_v26, %v2751_v25  ;;  %v357_v28 = vpop.f32.mrb[1].mxu0 }
  0xd9   :  { %v358_v29 = vadd.f32 %v2751_v25, %v357_v28  ;;  %v2777_v51 = vpop.f32.mrb[0].mxu1 }
  0xda   :  { %v677_v35 = vmax.f32 %v363_v27, 0.0  ;;  %v2785_v54 = vpop.f32.mrb[1].mxu1 }
  0xdb   :  { %v676_v30 = vmax.f32 %v358_v29, 0.0  ;;  %v1988_v31 = vpop.f32.mrb[2].mxu0 }
  0xdc   :  { %v373_v36 = vadd.f32 %v1988_v31, %v2751_v25  ;;  %v367_v37 = vpop.f32.mrb[3].mxu0 }
  0xdd   :  { %v368_v40 = vadd.f32 %v2751_v25, %v367_v37  ;;  %2111 = vmatprep.mubr.f32.mxu1 %v676_v30  ;;  %v2789_v62 = vpop.f32.mrb[2].mxu1  ;;  %v2391_v30 = vpack.c.bf16 %v1225_v22, %v1224_v21 }
  0xde   :  { %2112 = vmatmul.mubr.f32.vlgmr.msra.gmra.mrb[32].mxu1 %v677_v35  ;;  %v679_v46 = vmax.f32 %v373_v36, 0.0  ;;  %v2797_v1 = vpop.f32.mrb[3].mxu1 }
  0xdf   :  { %v678_v44 = vmax.f32 %v368_v40, 0.0  ;;  %v1991_v45 = vpop.f32.mrb[4].mxu0  ;;  %2392 = vmatprep.subr.bf16.mxu0 %v2391_v30 }
  0xe0   :  { %v383_v47 = vadd.f32 %v1991_v45, %v2751_v25  ;;  %v377_v48 = vpop.f32.mrb[5].mxu0  ;;  %2394 = vmatpush3.bf16.msra.mxu0 %v2391_v30 }
  0xe1   :  { %v378_v50 = vadd.f32 %v2751_v25, %v377_v48  ;;  %2114 = vmatprep.mubr.f32.mxu1 %v678_v44  ;;  %v2801_v9 = vpop.f32.mrb[4].mxu1  ;;  %2396 = vmatprep.subr.bf16.mxu0 %v2395_v41 }
  0xe2   :  { %2115 = vmatmul.mubr.f32.gmra.mrb[34].mxu1 %v679_v46  ;;  %v681_v57 = vmax.f32 %v383_v47, 0.0  ;;  %v2809_v12 = vpop.f32.mrb[5].mxu1 }
  0xe3   :  { %v680_v55 = vmax.f32 %v378_v50, 0.0  ;;  %v1994_v56 = vpop.f32.mrb[6].mxu0 }
  0xe4   :  { %v393_v58 = vadd.f32 %v1994_v56, %v2751_v25  ;;  %v387_v59 = vpop.f32.mrb[7].mxu0  ;;  %2398 = vmatpush3.bf16.msra.mxu0 %v2395_v41 }
  0xe5   :  { %v388_v61 = vadd.f32 %v2751_v25, %v387_v59  ;;  %2117 = vmatprep.mubr.f32.mxu1 %v680_v55  ;;  %v2813_v20 = vpop.f32.mrb[6].mxu1 }
  0xe6   :  { %2118 = vmatmul.mubr.f32.gmra.mrb[36].mxu1 %v681_v57  ;;  %v683_v4 = vmax.f32 %v393_v58, 0.0  ;;  %v2821_v23 = vpop.f32.mrb[7].mxu1 }
  0xe7   :  { %v682_v2 = vmax.f32 %v388_v61, 0.0  ;;  %v1997_v3 = vpop.f32.mrb[8].mxu0 }
  0xe8   :  { %v403_v5 = vadd.f32 %v1997_v3, %v2751_v25  ;;  %v397_v6 = vpop.f32.mrb[9].mxu0 }
  0xe9   :  { %v398_v8 = vadd.f32 %v2751_v25, %v397_v6  ;;  %2120 = vmatprep.mubr.f32.mxu1 %v682_v2  ;;  %v2825_v32 = vpop.f32.mrb[8].mxu1 }
  0xea   :  { %2121 = vmatmul.mubr.f32.gmra.mrb[38].mxu1 %v683_v4  ;;  %v685_v15 = vmax.f32 %v403_v5, 0.0  ;;  %v2833_v35 = vpop.f32.mrb[9].mxu1 }
  0xeb   :  { %v684_v13 = vmax.f32 %v398_v8, 0.0  ;;  %v2000_v14 = vpop.f32.mrb[10].mxu0 }
  0xec   :  { %v413_v16 = vadd.f32 %v2000_v14, %v2751_v25  ;;  %v407_v17 = vpop.f32.mrb[11].mxu0 }
  0xed   :  { %v408_v19 = vadd.f32 %v2751_v25, %v407_v17  ;;  %2123 = vmatprep.mubr.f32.mxu1 %v684_v13  ;;  %v2837_v43 = vpop.f32.mrb[10].mxu1 }
  0xee   :  { %2124 = vmatmul.mubr.f32.gmra.mrb[40].mxu1 %v685_v15  ;;  %v687_v27 = vmax.f32 %v413_v16, 0.0  ;;  %v2839_v44 = vpop.f32.mrb[11].mxu1 }
  0xef   :  { %v686_v24 = vmax.f32 %v408_v19, 0.0  ;;  %v2003_v26 = vpop.f32.mrb[12].mxu0 }
  0xf0   :  { %v423_v28 = vadd.f32 %v2003_v26, %v2751_v25  ;;  %v417_v29 = vpop.f32.mrb[13].mxu0 }
  0xf1   :  { %v418_v31 = vadd.f32 %v2751_v25, %v417_v29  ;;  %2126 = vmatprep.mubr.f32.mxu1 %v686_v24  ;;  %v2843_v52 = vpop.f32.mrb[12].mxu1 }
  0xf2   :  { %2127 = vmatmul.mubr.f32.gmra.mrb[42].mxu1 %v687_v27  ;;  %v689_v38 = vmax.f32 %v423_v28, 0.0  ;;  %v2845_v53 = vpop.f32.mrb[13].mxu1 }
  0xf3   :  { %v688_v36 = vmax.f32 %v418_v31, 0.0  ;;  %v2006_v37 = vpop.f32.mrb[14].mxu0 }
  0xf4   :  { %v433_v39 = vadd.f32 %v2006_v37, %v2751_v25  ;;  %v427_v40 = vpop.f32.mrb[15].mxu0 }
  0xf5   :  { %v428_v42 = vadd.f32 %v2751_v25, %v427_v40  ;;  %2129 = vmatprep.mubr.f32.mxu1 %v688_v36  ;;  %v2849_v61 = vpop.f32.mrb[14].mxu1 }
  0xf6   :  { %2130 = vmatmul.mubr.f32.gmra.mrb[44].mxu1 %v689_v38  ;;  %v691_v47 = vmax.f32 %v433_v39, 0.0  ;;  %v2851_v63 = vpop.f32.mrb[15].mxu1 }
  0xf7   :  { %v690_v45 = vmax.f32 %v428_v42, 0.0  ;;  %v2009_v46 = vpop.f32.mrb[16].mxu0 }
  0xf8   :  { %v443_v48 = vadd.f32 %v2009_v46, %v2751_v25  ;;  %v437_v49 = vpop.f32.mrb[17].mxu0 }
  0xf9   :  { %v438_v50 = vadd.f32 %v2751_v25, %v437_v49  ;;  %2132 = vmatprep.mubr.f32.mxu1 %v690_v45  ;;  %v2855_v7 = vpop.f32.mrb[16].mxu1 }
  0xfa   :  { %2133 = vmatmul.mubr.f32.gmra.mrb[46].mxu1 %v691_v47  ;;  %v693_v57 = vmax.f32 %v443_v48, 0.0  ;;  %v2857_v8 = vpop.f32.mrb[17].mxu1 }
  0xfb   :  { %v692_v55 = vmax.f32 %v438_v50, 0.0  ;;  %v2012_v56 = vpop.f32.mrb[18].mxu0 }
  0xfc   :  { %v453_v58 = vadd.f32 %v2012_v56, %v2751_v25  ;;  %v447_v59 = vpop.f32.mrb[19].mxu0  ;;  %v518_v56 = vadd.f32 %v2751_v25, %v2785_v54  ;;  %v523_v54 = vadd.f32 %v2777_v51, %v2751_v25 }
  0xfd   :  { %v448_v60 = vadd.f32 %v2751_v25, %v447_v59  ;;  %2135 = vmatprep.mubr.f32.mxu1 %v692_v55  ;;  %v2861_v17 = vpop.f32.mrb[18].mxu1 }
  0xfe   :  { %2136 = vmatmul.mubr.f32.gmra.mrb[48].mxu1 %v693_v57  ;;  %v695_v3 = vmax.f32 %v453_v58, 0.0  ;;  %v2863_v18 = vpop.f32.mrb[19].mxu1 }
  0xff   :  { %v694_v0 = vmax.f32 %v448_v60, 0.0  ;;  %v2015_v2 = vpop.f32.mrb[20].mxu0 }
 0x100   :  { %v463_v4 = vadd.f32 %v2015_v2, %v2751_v25  ;;  %v457_v5 = vpop.f32.mrb[21].mxu0 }
 0x101   :  { %v458_v6 = vadd.f32 %v2751_v25, %v457_v5  ;;  %2138 = vmatprep.mubr.f32.mxu1 %v694_v0  ;;  %v2867_v28 = vpop.f32.mrb[20].mxu1  ;;  %v528_v5 = vadd.f32 %v2751_v25, %v2797_v1 }
 0x102   :  { %2139 = vmatmul.mubr.f32.gmra.mrb[50].mxu1 %v695_v3  ;;  %v697_v13 = vmax.f32 %v463_v4, 0.0  ;;  %v2869_v29 = vpop.f32.mrb[21].mxu1  ;;  %v708_v4 = vmax.f32 %v518_v56, 0.0 }
 0x103   :  { %v696_v10 = vmax.f32 %v458_v6, 0.0  ;;  %v2018_v11 = vpop.f32.mrb[22].mxu0 }
 0x104   :  { %v473_v14 = vadd.f32 %v2018_v11, %v2751_v25  ;;  %v467_v15 = vpop.f32.mrb[23].mxu0 }
 0x105   :  { %v468_v16 = vadd.f32 %v2751_v25, %v467_v15  ;;  %2141 = vmatprep.mubr.f32.mxu1 %v696_v10  ;;  %v2873_v38 = vpop.f32.mrb[22].mxu1  ;;  %v709_v15 = vmax.f32 %v523_v54, 0.0 }
 0x106   :  { %2142 = vmatmul.mubr.f32.gmra.mrb[52].mxu1 %v697_v13  ;;  %v699_v22 = vmax.f32 %v473_v14, 0.0  ;;  %v2875_v39 = vpop.f32.mrb[23].mxu1  ;;  %v710_v13 = vmax.f32 %v528_v5, 0.0  ;;  %v538_v14 = vadd.f32 %v2751_v25, %v2809_v12 }
 0x107   :  { %v698_v19 = vmax.f32 %v468_v16, 0.0  ;;  %v2021_v21 = vpop.f32.mrb[24].mxu0  ;;  %v533_v16 = vadd.f32 %v2789_v62, %v2751_v25  ;;  %v558_v62 = vadd.f32 %v2751_v25, %v2833_v35  ;;  %v578_v35 = vadd.f32 %v2751_v25, %v2845_v53 }
 0x108   :  { %v483_v24 = vadd.f32 %v2021_v21, %v2751_v25  ;;  %v477_v26 = vpop.f32.mrb[25].mxu0  ;;  %v712_v51 = vmax.f32 %v538_v14, 0.0  ;;  %v548_v21 = vadd.f32 %v2751_v25, %v2821_v23  ;;  %v568_v23 = vadd.f32 %v2751_v25, %v2839_v44 }
 0x109   :  { %v478_v27 = vadd.f32 %v2751_v25, %v477_v26  ;;  %2144 = vmatprep.mubr.f32.mxu1 %v698_v19  ;;  %v2879_v48 = vpop.f32.mrb[24].mxu1  ;;  %v588_v44 = vadd.f32 %v2751_v25, %v2851_v63  ;;  %v598_v53 = vadd.f32 %v2751_v25, %v2857_v8  ;;  %v608_v63 = vadd.f32 %v2751_v25, %v2863_v18 }
 0x10a   :  { %2145 = vmatmul.mubr.f32.gmra.mrb[54].mxu1 %v699_v22  ;;  %v701_v33 = vmax.f32 %v483_v24, 0.0  ;;  %v2881_v49 = vpop.f32.mrb[25].mxu1  ;;  %v711_v22 = vmax.f32 %v533_v16, 0.0  ;;  %v543_v24 = vadd.f32 %v2801_v9, %v2751_v25  ;;  %v714_v12 = vmax.f32 %v548_v21, 0.0 }
 0x10b   :  { %v700_v30 = vmax.f32 %v478_v27, 0.0  ;;  %v2024_v31 = vpop.f32.mrb[26].mxu0  ;;  %v553_v27 = vadd.f32 %v2813_v20, %v2751_v25  ;;  %v563_v9 = vadd.f32 %v2825_v32, %v2751_v25  ;;  %v573_v20 = vadd.f32 %v2837_v43, %v2751_v25 }
 0x10c   :  { %v493_v34 = vadd.f32 %v2024_v31, %v2751_v25  ;;  %v487_v36 = vpop.f32.mrb[27].mxu0  ;;  %v713_v26 = vmax.f32 %v543_v24, 0.0  ;;  %v583_v32 = vadd.f32 %v2843_v52, %v2751_v25  ;;  %v593_v43 = vadd.f32 %v2849_v61, %v2751_v25 }
 0x10d   :  { %v488_v37 = vadd.f32 %v2751_v25, %v487_v36  ;;  %2147 = vmatprep.mubr.f32.mxu1 %v700_v30  ;;  %v2887_v0 = vpop.f32.mrb[26].mxu1  ;;  %v716_v30 = vmax.f32 %v558_v62, 0.0  ;;  %v715_v31 = vmax.f32 %v553_v27, 0.0  ;;  %v720_v36 = vmax.f32 %v578_v35, 0.0 }
 0x10e   :  { %2148 = vmatmul.mubr.f32.gmra.mrb[56].mxu1 %v701_v33  ;;  %v703_v42 = vmax.f32 %v493_v34, 0.0  ;;  %v2889_v2 = vpop.f32.mrb[27].mxu1  ;;  %v718_v33 = vmax.f32 %v568_v23, 0.0  ;;  %v717_v34 = vmax.f32 %v563_v9, 0.0  ;;  %v603_v52 = vadd.f32 %v2855_v7, %v2751_v25 }
 0x10f   :  { %v702_v40 = vmax.f32 %v488_v37, 0.0  ;;  %v2027_v41 = vpop.f32.mrb[28].mxu0  ;;  %v719_v37 = vmax.f32 %v573_v20, 0.0  ;;  %v618_v8 = vadd.f32 %v2751_v25, %v2869_v29  ;;  %v613_v61 = vadd.f32 %v2861_v17, %v2751_v25 }
 0x110   :  { %v503_v45 = vadd.f32 %v2027_v41, %v2751_v25  ;;  %v497_v46 = vpop.f32.mrb[29].mxu0  ;;  %v721_v41 = vmax.f32 %v583_v32, 0.0  ;;  %v628_v18 = vadd.f32 %v2751_v25, %v2875_v39  ;;  %v623_v7 = vadd.f32 %v2867_v28, %v2751_v25 }
 0x111   :  { %v498_v47 = vadd.f32 %v2751_v25, %v497_v46  ;;  %2150 = vmatprep.mubr.f32.mxu1 %v702_v40  ;;  %v2895_v10 = vpop.f32.mrb[28].mxu1  ;;  %v722_v40 = vmax.f32 %v588_v44, 0.0  ;;  %v726_v46 = vmax.f32 %v608_v63, 0.0  ;;  %v638_v29 = vadd.f32 %v2751_v25, %v2881_v49 }
 0x112   :  { %2151 = vmatmul.mubr.f32.gmra.mrb[58].mxu1 %v703_v42  ;;  %v705_v57 = vmax.f32 %v503_v45, 0.0  ;;  %v2897_v11 = vpop.f32.mrb[29].mxu1  ;;  %v724_v42 = vmax.f32 %v598_v53, 0.0  ;;  %v723_v45 = vmax.f32 %v593_v43, 0.0  ;;  %v730_v56 = vmax.f32 %v628_v18, 0.0 }
 0x113   :  { %v704_v50 = vmax.f32 %v498_v47, 0.0  ;;  %v2030_v55 = vpop.f32.mrb[30].mxu0  ;;  %v725_v47 = vmax.f32 %v603_v52, 0.0  ;;  %v633_v17 = vadd.f32 %v2873_v38, %v2751_v25  ;;  %v648_v39 = vadd.f32 %v2751_v25, %v2889_v2 }
 0x114   :  { %v513_v58 = vadd.f32 %v2030_v55, %v2751_v25  ;;  %v507_v59 = vpop.f32.mrb[31].mxu0  ;;  %v727_v55 = vmax.f32 %v613_v61, 0.0  ;;  %v643_v28 = vadd.f32 %v2879_v48, %v2751_v25  ;;  %v658_v49 = vadd.f32 %v2751_v25, %v2897_v11 }
 0x115   :  { %v508_v60 = vadd.f32 %v2751_v25, %v507_v59  ;;  %2153 = vmatprep.mubr.f32.mxu1 %v704_v50  ;;  %v2903_v1 = vpop.f32.mrb[30].mxu1  ;;  %v728_v50 = vmax.f32 %v618_v8, 0.0  ;;  %v731_v59 = vmax.f32 %v633_v17, 0.0  ;;  %v653_v38 = vadd.f32 %v2887_v0, %v2751_v25 }
 0x116   :  { %2154 = vmatmul.mubr.f32.gmra.mrb[60].mxu1 %v705_v57  ;;  %v707_v6 = vmax.f32 %v513_v58, 0.0  ;;  %v2905_v19 = vpop.f32.mrb[31].mxu1  ;;  %v729_v57 = vmax.f32 %v623_v7, 0.0  ;;  %v732_v58 = vmax.f32 %v638_v29, 0.0  ;;  %v663_v48 = vadd.f32 %v2895_v10, %v2751_v25 }
 0x117   :  { %v706_v3 = vmax.f32 %v508_v60, 0.0  ;;  %v734_v60 = vmax.f32 %v648_v39, 0.0  ;;  %v668_v2 = vadd.f32 %v2751_v25, %v2905_v19  ;;  %v735_v5 = vmax.f32 %v653_v38, 0.0 }
 0x118   :  { %v737_v54 = vmax.f32 %v663_v48, 0.0  ;;  %v673_v11 = vadd.f32 %v2903_v1, %v2751_v25 }
 0x119   :  { %2156 = vmatprep.mubr.f32.mxu1 %v706_v3  ;;  %v733_v3 = vmax.f32 %v643_v28, 0.0 }
 0x11a   :  { %2157 = vmatmul.mubr.f32.gmra.mrb[62].mxu1 %v707_v6  ;;  %v738_v6 = vmax.f32 %v668_v2, 0.0  ;;  %v739_v0 = vmax.f32 %v673_v11, 0.0 }
 0x11b   :  { %2159 = vmatprep.mubr.f32.mxu1 %v708_v4  ;;  %v736_v4 = vmax.f32 %v658_v49, 0.0 }
 0x11e   :  { %2160 = vmatmul.mubr.f32.gmra.mrb[64].mxu1 %v709_v15 }
 0x11f   :  { %2162 = vmatprep.mubr.f32.mxu1 %v710_v13  ;;  %v2964_v13 = vld [vmem:[%s3360_s4] ss:$0 sm:$0xff] }
 0x122   :  { %2163 = vmatmul.mubr.f32.gmra.mrb[66].mxu1 %v711_v22 }
 0x123   :  { %2165 = vmatprep.mubr.f32.mxu1 %v712_v51 }
 0x126   :  { %2166 = vmatmul.mubr.f32.gmra.mrb[68].mxu1 %v713_v26 }
 0x127   :  { %2168 = vmatprep.mubr.f32.mxu1 %v714_v12 }
 0x12a   :  { %2169 = vmatmul.mubr.f32.gmra.mrb[70].mxu1 %v715_v31 }
 0x12b   :  { %2171 = vmatprep.mubr.f32.mxu1 %v716_v30 }
 0x12e   :  { %2172 = vmatmul.mubr.f32.gmra.mrb[72].mxu1 %v717_v34 }
 0x12f   :  { %2174 = vmatprep.mubr.f32.mxu1 %v718_v33 }
 0x132   :  { %2175 = vmatmul.mubr.f32.gmra.mrb[74].mxu1 %v719_v37 }
 0x133   :  { %2177 = vmatprep.mubr.f32.mxu1 %v720_v36 }
 0x136   :  { %2178 = vmatmul.mubr.f32.gmra.mrb[76].mxu1 %v721_v41 }
 0x137   :  { %2180 = vmatprep.mubr.f32.mxu1 %v722_v40 }
 0x13a   :  { %2181 = vmatmul.mubr.f32.gmra.mrb[78].mxu1 %v723_v45 }
 0x13b   :  { %2183 = vmatprep.mubr.f32.mxu1 %v724_v42 }
 0x13e   :  { %2184 = vmatmul.mubr.f32.gmra.mrb[80].mxu1 %v725_v47 }
 0x13f   :  { %2186 = vmatprep.mubr.f32.mxu1 %v726_v46 }
 0x142   :  { %2187 = vmatmul.mubr.f32.gmra.mrb[82].mxu1 %v727_v55 }
 0x143   :  { %2189 = vmatprep.mubr.f32.mxu1 %v728_v50 }
 0x146   :  { %2190 = vmatmul.mubr.f32.gmra.mrb[84].mxu1 %v729_v57 }
 0x147   :  { %2192 = vmatprep.mubr.f32.mxu1 %v730_v56 }
 0x14a   :  { %2193 = vmatmul.mubr.f32.gmra.mrb[86].mxu1 %v731_v59 }
 0x14b   :  { %2195 = vmatprep.mubr.f32.mxu1 %v732_v58 }
 0x14e   :  { %2196 = vmatmul.mubr.f32.gmra.mrb[88].mxu1 %v733_v3 }
 0x14f   :  { %2198 = vmatprep.mubr.f32.mxu1 %v734_v60 }
 0x152   :  { %2199 = vmatmul.mubr.f32.gmra.mrb[90].mxu1 %v735_v5 }
 0x153   :  { %2201 = vmatprep.mubr.f32.mxu1 %v736_v4 }
 0x156   :  { %2202 = vmatmul.mubr.f32.gmra.mrb[92].mxu1 %v737_v54 }
 0x157   :  { %2204 = vmatprep.mubr.f32.mxu1 %v738_v6 }
 0x15a   :  { %2205 = vmatmul.mubr.f32.gmra.mrb[94].mxu1 %v739_v0 }
 0x1b1   :  { %v2113_v14 = vpop.f32.mrb[32].mxu1 }
 0x1b2   :  { %v835_v15 = vadd.f32 %v2113_v14, %v2964_v13  ;;  %v829_v10 = vpop.f32.mrb[33].mxu1 }
 0x1b3   :  { %v830_v16 = vadd.f32 %v2964_v13, %v829_v10 }
 0x1b4   :  { %v1149_v21 = vmax.f32 %v835_v15, 0.0 }
 0x1b5   :  { %v1148_v19 = vmax.f32 %v830_v16, 0.0  ;;  %v2116_v51 = vpop.f32.mrb[34].mxu1 }
 0x1b6   :  { %v845_v25 = vadd.f32 %v2116_v51, %v2964_v13  ;;  %v839_v1 = vpop.f32.mrb[35].mxu1 }
 0x1b7   :  { %v840_v22 = vadd.f32 %v2964_v13, %v839_v1  ;;  %2239 = vmatprep.mubr.f32.mxu0 %v1148_v19 }
 0x1b8   :  { %2240 = vmatmul.mubr.f32.vlgmr.msra.gmra.mrb[32].mxu0 %v1149_v21  ;;  %v1151_v62 = vmax.f32 %v845_v25, 0.0 }
 0x1b9   :  { %v1150_v24 = vmax.f32 %v840_v22, 0.0  ;;  %v2119_v12 = vpop.f32.mrb[36].mxu1 }
 0x1ba   :  { %v855_v26 = vadd.f32 %v2119_v12, %v2964_v13  ;;  %v849_v27 = vpop.f32.mrb[37].mxu1 }
 0x1bb   :  { %v850_v30 = vadd.f32 %v2964_v13, %v849_v27  ;;  %2242 = vmatprep.mubr.f32.mxu0 %v1150_v24 }
 0x1bc   :  { %2243 = vmatmul.mubr.f32.gmra.mrb[34].mxu0 %v1151_v62  ;;  %v1153_v9 = vmax.f32 %v855_v26, 0.0 }
 0x1bd   :  { %v1152_v23 = vmax.f32 %v850_v30, 0.0  ;;  %v2122_v31 = vpop.f32.mrb[38].mxu1 }
 0x1be   :  { %v865_v33 = vadd.f32 %v2122_v31, %v2964_v13  ;;  %v859_v35 = vpop.f32.mrb[39].mxu1 }
 0x1bf   :  { %v860_v34 = vadd.f32 %v2964_v13, %v859_v35  ;;  %2245 = vmatprep.mubr.f32.mxu0 %v1152_v23 }
 0x1c0   :  { %2246 = vmatmul.mubr.f32.gmra.mrb[36].mxu0 %v1153_v9  ;;  %v1155_v44 = vmax.f32 %v865_v33, 0.0 }
 0x1c1   :  { %v1154_v20 = vmax.f32 %v860_v34, 0.0  ;;  %v2125_v36 = vpop.f32.mrb[40].mxu1 }
 0x1c2   :  { %v875_v37 = vadd.f32 %v2125_v36, %v2964_v13  ;;  %v869_v32 = vpop.f32.mrb[41].mxu1 }
 0x1c3   :  { %v870_v40 = vadd.f32 %v2964_v13, %v869_v32  ;;  %2248 = vmatprep.mubr.f32.mxu0 %v1154_v20 }
 0x1c4   :  { %2249 = vmatmul.mubr.f32.gmra.mrb[38].mxu0 %v1155_v44  ;;  %v1157_v43 = vmax.f32 %v875_v37, 0.0 }
 0x1c5   :  { %v1156_v53 = vmax.f32 %v870_v40, 0.0  ;;  %v2128_v41 = vpop.f32.mrb[42].mxu1 }
 0x1c6   :  { %v885_v42 = vadd.f32 %v2128_v41, %v2964_v13  ;;  %v879_v63 = vpop.f32.mrb[43].mxu1 }
 0x1c7   :  { %v880_v45 = vadd.f32 %v2964_v13, %v879_v63  ;;  %2251 = vmatprep.mubr.f32.mxu0 %v1156_v53 }
 0x1c8   :  { %2252 = vmatmul.mubr.f32.gmra.mrb[40].mxu0 %v1157_v43  ;;  %v1159_v8 = vmax.f32 %v885_v42, 0.0 }
 0x1c9   :  { %v1158_v52 = vmax.f32 %v880_v45, 0.0  ;;  %v2131_v46 = vpop.f32.mrb[44].mxu1 }
 0x1ca   :  { %v895_v47 = vadd.f32 %v2131_v46, %v2964_v13  ;;  %v889_v61 = vpop.f32.mrb[45].mxu1 }
 0x1cb   :  { %v890_v50 = vadd.f32 %v2964_v13, %v889_v61  ;;  %2254 = vmatprep.mubr.f32.mxu0 %v1158_v52 }
 0x1cc   :  { %2255 = vmatmul.mubr.f32.gmra.mrb[42].mxu0 %v1159_v8  ;;  %v1161_v7 = vmax.f32 %v895_v47, 0.0 }
 0x1cd   :  { %v1160_v18 = vmax.f32 %v890_v50, 0.0  ;;  %v2134_v55 = vpop.f32.mrb[46].mxu1 }
 0x1ce   :  { %v905_v56 = vadd.f32 %v2134_v55, %v2964_v13  ;;  %v899_v29 = vpop.f32.mrb[47].mxu1 }
 0x1cf   :  { %v900_v57 = vadd.f32 %v2964_v13, %v899_v29  ;;  %2257 = vmatprep.mubr.f32.mxu0 %v1160_v18 }
 0x1d0   :  { %2258 = vmatmul.mubr.f32.gmra.mrb[44].mxu0 %v1161_v7  ;;  %v1163_v39 = vmax.f32 %v905_v56, 0.0 }
 0x1d1   :  { %v1162_v17 = vmax.f32 %v900_v57, 0.0  ;;  %v2137_v58 = vpop.f32.mrb[48].mxu1 }
 0x1d2   :  { %v915_v59 = vadd.f32 %v2137_v58, %v2964_v13  ;;  %v909_v28 = vpop.f32.mrb[49].mxu1 }
 0x1d3   :  { %v910_v60 = vadd.f32 %v2964_v13, %v909_v28  ;;  %2260 = vmatprep.mubr.f32.mxu0 %v1162_v17 }
 0x1d4   :  { %2261 = vmatmul.mubr.f32.gmra.mrb[46].mxu0 %v1163_v39  ;;  %v1165_v38 = vmax.f32 %v915_v59, 0.0 }
 0x1d5   :  { %v1164_v49 = vmax.f32 %v910_v60, 0.0  ;;  %v2140_v3 = vpop.f32.mrb[50].mxu1 }
 0x1d6   :  { %v925_v4 = vadd.f32 %v2140_v3, %v2964_v13  ;;  %v919_v2 = vpop.f32.mrb[51].mxu1 }
 0x1d7   :  { %v920_v5 = vadd.f32 %v2964_v13, %v919_v2  ;;  %2263 = vmatprep.mubr.f32.mxu0 %v1164_v49 }
 0x1d8   :  { %2264 = vmatmul.mubr.f32.gmra.mrb[48].mxu0 %v1165_v38  ;;  %v1167_v54 = vmax.f32 %v925_v4, 0.0 }
 0x1d9   :  { %v1166_v48 = vmax.f32 %v920_v5, 0.0  ;;  %v2143_v6 = vpop.f32.mrb[52].mxu1 }
 0x1da   :  { %v935_v11 = vadd.f32 %v2143_v6, %v2964_v13  ;;  %v929_v0 = vpop.f32.mrb[53].mxu1 }
 0x1db   :  { %v930_v14 = vadd.f32 %v2964_v13, %v929_v0  ;;  %2266 = vmatprep.mubr.f32.mxu0 %v1166_v48 }
 0x1dc   :  { %2267 = vmatmul.mubr.f32.gmra.mrb[50].mxu0 %v1167_v54  ;;  %v1169_v16 = vmax.f32 %v935_v11, 0.0 }
 0x1dd   :  { %v1168_v15 = vmax.f32 %v930_v14, 0.0  ;;  %v2146_v10 = vpop.f32.mrb[54].mxu1 }
 0x1de   :  { %v945_v19 = vadd.f32 %v2146_v10, %v2964_v13  ;;  %v939_v51 = vpop.f32.mrb[55].mxu1 }
 0x1df   :  { %v940_v21 = vadd.f32 %v2964_v13, %v939_v51  ;;  %2269 = vmatprep.mubr.f32.mxu0 %v1168_v15 }
 0x1e0   :  { %2270 = vmatmul.mubr.f32.gmra.mrb[52].mxu0 %v1169_v16  ;;  %v1171_v22 = vmax.f32 %v945_v19, 0.0 }
 0x1e1   :  { %v1170_v25 = vmax.f32 %v940_v21, 0.0  ;;  %v2149_v1 = vpop.f32.mrb[56].mxu1 }
 0x1e2   :  { %v955_v24 = vadd.f32 %v2149_v1, %v2964_v13  ;;  %v949_v12 = vpop.f32.mrb[57].mxu1 }
 0x1e3   :  { %v950_v62 = vadd.f32 %v2964_v13, %v949_v12  ;;  %2272 = vmatprep.mubr.f32.mxu0 %v1170_v25 }
 0x1e4   :  { %2273 = vmatmul.mubr.f32.gmra.mrb[54].mxu0 %v1171_v22  ;;  %v1173_v30 = vmax.f32 %v955_v24, 0.0 }
 0x1e5   :  { %v1172_v26 = vmax.f32 %v950_v62, 0.0  ;;  %v2152_v27 = vpop.f32.mrb[58].mxu1 }
 0x1e6   :  { %v965_v23 = vadd.f32 %v2152_v27, %v2964_v13  ;;  %v959_v31 = vpop.f32.mrb[59].mxu1 }
 0x1e7   :  { %v960_v9 = vadd.f32 %v2964_v13, %v959_v31  ;;  %2275 = vmatprep.mubr.f32.mxu0 %v1172_v26 }
 0x1e8   :  { %2276 = vmatmul.mubr.f32.gmra.mrb[56].mxu0 %v1173_v30  ;;  %v1175_v34 = vmax.f32 %v965_v23, 0.0 }
 0x1e9   :  { %v1174_v33 = vmax.f32 %v960_v9, 0.0  ;;  %v2155_v35 = vpop.f32.mrb[60].mxu1 }
 0x1ea   :  { %v975_v20 = vadd.f32 %v2155_v35, %v2964_v13  ;;  %v969_v36 = vpop.f32.mrb[61].mxu1 }
 0x1eb   :  { %v970_v44 = vadd.f32 %v2964_v13, %v969_v36  ;;  %2278 = vmatprep.mubr.f32.mxu0 %v1174_v33 }
 0x1ec   :  { %2279 = vmatmul.mubr.f32.gmra.mrb[58].mxu0 %v1175_v34  ;;  %v1177_v40 = vmax.f32 %v975_v20, 0.0 }
 0x1ed   :  { %v1176_v37 = vmax.f32 %v970_v44, 0.0  ;;  %v2158_v32 = vpop.f32.mrb[62].mxu1 }
 0x1ee   :  { %v985_v53 = vadd.f32 %v2158_v32, %v2964_v13  ;;  %v979_v41 = vpop.f32.mrb[63].mxu1 }
 0x1ef   :  { %v980_v43 = vadd.f32 %v2964_v13, %v979_v41  ;;  %2281 = vmatprep.mubr.f32.mxu0 %v1176_v37 }
 0x1f0   :  { %2282 = vmatmul.mubr.f32.gmra.mrb[60].mxu0 %v1177_v40  ;;  %v1179_v45 = vmax.f32 %v985_v53, 0.0 }
 0x1f1   :  { %v1178_v42 = vmax.f32 %v980_v43, 0.0  ;;  %v2161_v63 = vpop.f32.mrb[64].mxu1 }
 0x1f2   :  { %v995_v52 = vadd.f32 %v2161_v63, %v2964_v13  ;;  %v989_v46 = vpop.f32.mrb[65].mxu1 }
 0x1f3   :  { %v990_v8 = vadd.f32 %v2964_v13, %v989_v46  ;;  %2284 = vmatprep.mubr.f32.mxu0 %v1178_v42 }
 0x1f4   :  { %2285 = vmatmul.mubr.f32.gmra.mrb[62].mxu0 %v1179_v45  ;;  %v1181_v50 = vmax.f32 %v995_v52, 0.0 }
 0x1f5   :  { %v1180_v47 = vmax.f32 %v990_v8, 0.0  ;;  %v2164_v61 = vpop.f32.mrb[66].mxu1 }
 0x1f6   :  { %v1005_v18 = vadd.f32 %v2164_v61, %v2964_v13  ;;  %v999_v55 = vpop.f32.mrb[67].mxu1 }
 0x1f7   :  { %v1000_v7 = vadd.f32 %v2964_v13, %v999_v55  ;;  %2287 = vmatprep.mubr.f32.mxu0 %v1180_v47 }
 0x1f8   :  { %2288 = vmatmul.mubr.f32.gmra.mrb[64].mxu0 %v1181_v50  ;;  %v1183_v57 = vmax.f32 %v1005_v18, 0.0 }
 0x1f9   :  { %v1182_v56 = vmax.f32 %v1000_v7, 0.0  ;;  %v2167_v29 = vpop.f32.mrb[68].mxu1 }
 0x1fa   :  { %v1015_v17 = vadd.f32 %v2167_v29, %v2964_v13  ;;  %v1009_v58 = vpop.f32.mrb[69].mxu1 }
 0x1fb   :  { %v1010_v39 = vadd.f32 %v2964_v13, %v1009_v58  ;;  %2290 = vmatprep.mubr.f32.mxu0 %v1182_v56 }
 0x1fc   :  { %2291 = vmatmul.mubr.f32.gmra.mrb[66].mxu0 %v1183_v57  ;;  %v1185_v60 = vmax.f32 %v1015_v17, 0.0 }
 0x1fd   :  { %v1184_v59 = vmax.f32 %v1010_v39, 0.0  ;;  %v2170_v28 = vpop.f32.mrb[70].mxu1 }
 0x1fe   :  { %v1025_v49 = vadd.f32 %v2170_v28, %v2964_v13  ;;  %v1019_v3 = vpop.f32.mrb[71].mxu1 }
 0x1ff   :  { %v1020_v38 = vadd.f32 %v2964_v13, %v1019_v3  ;;  %2293 = vmatprep.mubr.f32.mxu0 %v1184_v59 }
 0x200   :  { %2294 = vmatmul.mubr.f32.gmra.mrb[68].mxu0 %v1185_v60  ;;  %v1187_v5 = vmax.f32 %v1025_v49, 0.0 }
 0x201   :  { %v1186_v4 = vmax.f32 %v1020_v38, 0.0  ;;  %v2173_v2 = vpop.f32.mrb[72].mxu1 }
 0x202   :  { %v1035_v48 = vadd.f32 %v2173_v2, %v2964_v13  ;;  %v1029_v6 = vpop.f32.mrb[73].mxu1 }
 0x203   :  { %v1030_v54 = vadd.f32 %v2964_v13, %v1029_v6  ;;  %2296 = vmatprep.mubr.f32.mxu0 %v1186_v4 }
 0x204   :  { %2297 = vmatmul.mubr.f32.gmra.mrb[70].mxu0 %v1187_v5  ;;  %v1189_v14 = vmax.f32 %v1035_v48, 0.0 }
 0x205   :  { %v1188_v11 = vmax.f32 %v1030_v54, 0.0  ;;  %v2176_v0 = vpop.f32.mrb[74].mxu1 }
 0x206   :  { %v1045_v15 = vadd.f32 %v2176_v0, %v2964_v13  ;;  %v1039_v10 = vpop.f32.mrb[75].mxu1 }
 0x207   :  { %v1040_v16 = vadd.f32 %v2964_v13, %v1039_v10  ;;  %2299 = vmatprep.mubr.f32.mxu0 %v1188_v11 }
 0x208   :  { %2300 = vmatmul.mubr.f32.gmra.mrb[72].mxu0 %v1189_v14  ;;  %v1191_v21 = vmax.f32 %v1045_v15, 0.0 }
 0x209   :  { %v1190_v19 = vmax.f32 %v1040_v16, 0.0  ;;  %v2179_v51 = vpop.f32.mrb[76].mxu1  ;;  %v3033_v16 = vld [vmem:[%s3361_s6] ss:$0 sm:$0xff] }
 0x20a   :  { %v1055_v25 = vadd.f32 %v2179_v51, %v2964_v13  ;;  %v1049_v1 = vpop.f32.mrb[77].mxu1 }
 0x20b   :  { %v1050_v22 = vadd.f32 %v2964_v13, %v1049_v1  ;;  %2302 = vmatprep.mubr.f32.mxu0 %v1190_v19 }
 0x20c   :  { %2303 = vmatmul.mubr.f32.gmra.mrb[74].mxu0 %v1191_v21  ;;  %v1193_v62 = vmax.f32 %v1055_v25, 0.0 }
 0x20d   :  { %v1192_v24 = vmax.f32 %v1050_v22, 0.0  ;;  %v2182_v12 = vpop.f32.mrb[78].mxu1 }
 0x20e   :  { %v1065_v26 = vadd.f32 %v2182_v12, %v2964_v13  ;;  %v1059_v27 = vpop.f32.mrb[79].mxu1 }
 0x20f   :  { %v1060_v30 = vadd.f32 %v2964_v13, %v1059_v27  ;;  %2305 = vmatprep.mubr.f32.mxu0 %v1192_v24 }
 0x210   :  { %2306 = vmatmul.mubr.f32.gmra.mrb[76].mxu0 %v1193_v62  ;;  %v1195_v9 = vmax.f32 %v1065_v26, 0.0 }
 0x211   :  { %v1194_v23 = vmax.f32 %v1060_v30, 0.0  ;;  %v2185_v31 = vpop.f32.mrb[80].mxu1 }
 0x212   :  { %v1075_v33 = vadd.f32 %v2185_v31, %v2964_v13  ;;  %v1069_v35 = vpop.f32.mrb[81].mxu1 }
 0x213   :  { %v1070_v34 = vadd.f32 %v2964_v13, %v1069_v35  ;;  %2308 = vmatprep.mubr.f32.mxu0 %v1194_v23 }
 0x214   :  { %2309 = vmatmul.mubr.f32.gmra.mrb[78].mxu0 %v1195_v9  ;;  %v1197_v44 = vmax.f32 %v1075_v33, 0.0 }
 0x215   :  { %v1196_v20 = vmax.f32 %v1070_v34, 0.0  ;;  %v2188_v36 = vpop.f32.mrb[82].mxu1 }
 0x216   :  { %v1085_v37 = vadd.f32 %v2188_v36, %v2964_v13  ;;  %v1079_v32 = vpop.f32.mrb[83].mxu1 }
 0x217   :  { %v1080_v40 = vadd.f32 %v2964_v13, %v1079_v32  ;;  %2311 = vmatprep.mubr.f32.mxu0 %v1196_v20 }
 0x218   :  { %2312 = vmatmul.mubr.f32.gmra.mrb[80].mxu0 %v1197_v44  ;;  %v1199_v43 = vmax.f32 %v1085_v37, 0.0 }
 0x219   :  { %v1198_v53 = vmax.f32 %v1080_v40, 0.0  ;;  %v2191_v41 = vpop.f32.mrb[84].mxu1 }
 0x21a   :  { %v1095_v42 = vadd.f32 %v2191_v41, %v2964_v13  ;;  %v1089_v63 = vpop.f32.mrb[85].mxu1 }
 0x21b   :  { %v1090_v45 = vadd.f32 %v2964_v13, %v1089_v63  ;;  %2314 = vmatprep.mubr.f32.mxu0 %v1198_v53 }
 0x21c   :  { %2315 = vmatmul.mubr.f32.gmra.mrb[82].mxu0 %v1199_v43  ;;  %v1201_v8 = vmax.f32 %v1095_v42, 0.0 }
 0x21d   :  { %v1200_v52 = vmax.f32 %v1090_v45, 0.0  ;;  %v2194_v46 = vpop.f32.mrb[86].mxu1 }
 0x21e   :  { %v1105_v47 = vadd.f32 %v2194_v46, %v2964_v13  ;;  %v1099_v61 = vpop.f32.mrb[87].mxu1 }
 0x21f   :  { %v1100_v50 = vadd.f32 %v2964_v13, %v1099_v61  ;;  %2317 = vmatprep.mubr.f32.mxu0 %v1200_v52 }
 0x220   :  { %2318 = vmatmul.mubr.f32.gmra.mrb[84].mxu0 %v1201_v8  ;;  %v1203_v7 = vmax.f32 %v1105_v47, 0.0 }
 0x221   :  { %v1202_v18 = vmax.f32 %v1100_v50, 0.0  ;;  %v2197_v55 = vpop.f32.mrb[88].mxu1 }
 0x222   :  { %v1115_v56 = vadd.f32 %v2197_v55, %v2964_v13  ;;  %v1109_v29 = vpop.f32.mrb[89].mxu1 }
 0x223   :  { %v1110_v57 = vadd.f32 %v2964_v13, %v1109_v29  ;;  %2320 = vmatprep.mubr.f32.mxu0 %v1202_v18 }
 0x224   :  { %2321 = vmatmul.mubr.f32.gmra.mrb[86].mxu0 %v1203_v7  ;;  %v1205_v39 = vmax.f32 %v1115_v56, 0.0 }
 0x225   :  { %v1204_v17 = vmax.f32 %v1110_v57, 0.0  ;;  %v2200_v58 = vpop.f32.mrb[90].mxu1 }
 0x226   :  { %v1125_v59 = vadd.f32 %v2200_v58, %v2964_v13  ;;  %v1119_v28 = vpop.f32.mrb[91].mxu1 }
 0x227   :  { %v1120_v60 = vadd.f32 %v2964_v13, %v1119_v28  ;;  %2323 = vmatprep.mubr.f32.mxu0 %v1204_v17 }
 0x228   :  { %2324 = vmatmul.mubr.f32.gmra.mrb[88].mxu0 %v1205_v39  ;;  %v1207_v38 = vmax.f32 %v1125_v59, 0.0 }
 0x229   :  { %v1206_v49 = vmax.f32 %v1120_v60, 0.0  ;;  %v2203_v3 = vpop.f32.mrb[92].mxu1 }
 0x22a   :  { %v1135_v4 = vadd.f32 %v2203_v3, %v2964_v13  ;;  %v1129_v2 = vpop.f32.mrb[93].mxu1 }
 0x22b   :  { %v1130_v5 = vadd.f32 %v2964_v13, %v1129_v2  ;;  %2326 = vmatprep.mubr.f32.mxu0 %v1206_v49 }
 0x22c   :  { %2327 = vmatmul.mubr.f32.gmra.mrb[90].mxu0 %v1207_v38  ;;  %v1209_v54 = vmax.f32 %v1135_v4, 0.0 }
 0x22d   :  { %v1208_v48 = vmax.f32 %v1130_v5, 0.0  ;;  %v2206_v6 = vpop.f32.mrb[94].mxu1 }
 0x22e   :  { %v1145_v11 = vadd.f32 %v2206_v6, %v2964_v13  ;;  %v1139_v0 = vpop.f32.mrb[95].mxu1 }
 0x22f   :  { %v1140_v14 = vadd.f32 %v2964_v13, %v1139_v0  ;;  %2329 = vmatprep.mubr.f32.mxu0 %v1208_v48 }
 0x230   :  { %2330 = vmatmul.mubr.f32.gmra.mrb[92].mxu0 %v1209_v54  ;;  %v1211_v10 = vmax.f32 %v1145_v11, 0.0 }
 0x231   :  { %v1210_v15 = vmax.f32 %v1140_v14, 0.0 }
 0x233   :  { %2332 = vmatprep.mubr.f32.mxu0 %v1210_v15 }
 0x234   :  { %2333 = vmatmul.mubr.f32.gmra.mrb[94].mxu0 %v1211_v10 }
 0x28b   :  { %v2241_v19 = vpop.f32.mrb[32].mxu0 }
 0x28c   :  { %v1307_v51 = vadd.f32 %v2241_v19, %v3033_v16  ;;  %v1301_v21 = vpop.f32.mrb[33].mxu0 }
 0x28d   :  { %v1302_v25 = vadd.f32 %v3033_v16, %v1301_v21 }
 0x28e   :  { %1622 = vst.msk [vmem:[%s3362_s7 + $0x8] sm:$0xff] %vm1620_vm1, %v1307_v51 }
 0x28f   :  { %1621 = vst.msk [vmem:[%s3362_s7] sm:$0xff] %vm1620_vm1, %v1302_v25  ;;  %v2244_v13 = vpop.f32.mrb[34].mxu0 }
 0x290   :  { %v1317_v1 = vadd.f32 %v2244_v13, %v3033_v16  ;;  %v1311_v22 = vpop.f32.mrb[35].mxu0 }
 0x291   :  { %v1312_v24 = vadd.f32 %v3033_v16, %v1311_v22 }
 0x292   :  { %1624 = vst.msk [vmem:[%s3362_s7 + $0x18] sm:$0xff] %vm1620_vm1, %v1317_v1 }
 0x293   :  { %1623 = vst.msk [vmem:[%s3362_s7 + $0x10] sm:$0xff] %vm1620_vm1, %v1312_v24  ;;  %v2247_v12 = vpop.f32.mrb[36].mxu0 }
 0x294   :  { %v1327_v62 = vadd.f32 %v2247_v12, %v3033_v16  ;;  %v1321_v26 = vpop.f32.mrb[37].mxu0 }
 0x295   :  { %v1322_v27 = vadd.f32 %v3033_v16, %v1321_v26 }
 0x296   :  { %1626 = vst.msk [vmem:[%s3362_s7 + $0x28] sm:$0xff] %vm1620_vm1, %v1327_v62 }
 0x297   :  { %1625 = vst.msk [vmem:[%s3362_s7 + $0x20] sm:$0xff] %vm1620_vm1, %v1322_v27  ;;  %v2250_v30 = vpop.f32.mrb[38].mxu0 }
 0x298   :  { %v1337_v23 = vadd.f32 %v2250_v30, %v3033_v16  ;;  %v1331_v31 = vpop.f32.mrb[39].mxu0 }
 0x299   :  { %v1332_v9 = vadd.f32 %v3033_v16, %v1331_v31 }
 0x29a   :  { %1628 = vst.msk [vmem:[%s3362_s7 + $0x38] sm:$0xff] %vm1620_vm1, %v1337_v23 }
 0x29b   :  { %1627 = vst.msk [vmem:[%s3362_s7 + $0x30] sm:$0xff] %vm1620_vm1, %v1332_v9  ;;  %v2253_v33 = vpop.f32.mrb[40].mxu0 }
 0x29c   :  { %v1347_v35 = vadd.f32 %v2253_v33, %v3033_v16  ;;  %v1341_v34 = vpop.f32.mrb[41].mxu0 }
 0x29d   :  { %v1342_v20 = vadd.f32 %v3033_v16, %v1341_v34 }
 0x29e   :  { %1630 = vst.msk [vmem:[%s3362_s7 + $0x48] sm:$0xff] %vm1620_vm1, %v1347_v35 }
 0x29f   :  { %1629 = vst.msk [vmem:[%s3362_s7 + $0x40] sm:$0xff] %vm1620_vm1, %v1342_v20  ;;  %v2256_v36 = vpop.f32.mrb[42].mxu0 }
 0x2a0   :  { %v1357_v44 = vadd.f32 %v2256_v36, %v3033_v16  ;;  %v1351_v37 = vpop.f32.mrb[43].mxu0 }
 0x2a1   :  { %v1352_v32 = vadd.f32 %v3033_v16, %v1351_v37 }
 0x2a2   :  { %1632 = vst.msk [vmem:[%s3362_s7 + $0x58] sm:$0xff] %vm1620_vm1, %v1357_v44 }
 0x2a3   :  { %1631 = vst.msk [vmem:[%s3362_s7 + $0x50] sm:$0xff] %vm1620_vm1, %v1352_v32  ;;  %v2259_v40 = vpop.f32.mrb[44].mxu0 }
 0x2a4   :  { %v1367_v53 = vadd.f32 %v2259_v40, %v3033_v16  ;;  %v1361_v41 = vpop.f32.mrb[45].mxu0 }
 0x2a5   :  { %v1362_v43 = vadd.f32 %v3033_v16, %v1361_v41 }
 0x2a6   :  { %1634 = vst.msk [vmem:[%s3362_s7 + $0x68] sm:$0xff] %vm1620_vm1, %v1367_v53 }
 0x2a7   :  { %1633 = vst.msk [vmem:[%s3362_s7 + $0x60] sm:$0xff] %vm1620_vm1, %v1362_v43  ;;  %v2262_v42 = vpop.f32.mrb[46].mxu0 }
 0x2a8   :  { %v1377_v63 = vadd.f32 %v2262_v42, %v3033_v16  ;;  %v1371_v45 = vpop.f32.mrb[47].mxu0 }
 0x2a9   :  { %v1372_v52 = vadd.f32 %v3033_v16, %v1371_v45 }
 0x2aa   :  { %1636 = vst.msk [vmem:[%s3362_s7 + $0x78] sm:$0xff] %vm1620_vm1, %v1377_v63 }
 0x2ab   :  { %1635 = vst.msk [vmem:[%s3362_s7 + $0x70] sm:$0xff] %vm1620_vm1, %v1372_v52  ;;  %v2265_v46 = vpop.f32.mrb[48].mxu0 }
 0x2ac   :  { %v1387_v8 = vadd.f32 %v2265_v46, %v3033_v16  ;;  %v1381_v47 = vpop.f32.mrb[49].mxu0 }
 0x2ad   :  { %v1382_v61 = vadd.f32 %v3033_v16, %v1381_v47 }
 0x2ae   :  { %1638 = vst.msk [vmem:[%s3362_s7 + $0x88] sm:$0xff] %vm1620_vm1, %v1387_v8 }
 0x2af   :  { %1637 = vst.msk [vmem:[%s3362_s7 + $0x80] sm:$0xff] %vm1620_vm1, %v1382_v61  ;;  %v2268_v50 = vpop.f32.mrb[50].mxu0 }
 0x2b0   :  { %v1397_v18 = vadd.f32 %v2268_v50, %v3033_v16  ;;  %v1391_v55 = vpop.f32.mrb[51].mxu0 }
 0x2b1   :  { %v1392_v7 = vadd.f32 %v3033_v16, %v1391_v55 }
 0x2b2   :  { %1640 = vst.msk [vmem:[%s3362_s7 + $0x98] sm:$0xff] %vm1620_vm1, %v1397_v18 }
 0x2b3   :  { %1639 = vst.msk [vmem:[%s3362_s7 + $0x90] sm:$0xff] %vm1620_vm1, %v1392_v7  ;;  %v2271_v56 = vpop.f32.mrb[52].mxu0 }
 0x2b4   :  { %v1407_v29 = vadd.f32 %v2271_v56, %v3033_v16  ;;  %v1401_v57 = vpop.f32.mrb[53].mxu0 }
 0x2b5   :  { %v1402_v17 = vadd.f32 %v3033_v16, %v1401_v57 }
 0x2b6   :  { %1642 = vst.msk [vmem:[%s3362_s7 + $0xa8] sm:$0xff] %vm1620_vm1, %v1407_v29 }
 0x2b7   :  { %1641 = vst.msk [vmem:[%s3362_s7 + $0xa0] sm:$0xff] %vm1620_vm1, %v1402_v17  ;;  %v2274_v58 = vpop.f32.mrb[54].mxu0 }
 0x2b8   :  { %v1417_v39 = vadd.f32 %v2274_v58, %v3033_v16  ;;  %v1411_v59 = vpop.f32.mrb[55].mxu0 }
 0x2b9   :  { %v1412_v28 = vadd.f32 %v3033_v16, %v1411_v59 }
 0x2ba   :  { %1644 = vst.msk [vmem:[%s3362_s7 + $0xb8] sm:$0xff] %vm1620_vm1, %v1417_v39 }
 0x2bb   :  { %1643 = vst.msk [vmem:[%s3362_s7 + $0xb0] sm:$0xff] %vm1620_vm1, %v1412_v28  ;;  %v2277_v60 = vpop.f32.mrb[56].mxu0 }
 0x2bc   :  { %v1427_v49 = vadd.f32 %v2277_v60, %v3033_v16  ;;  %v1421_v3 = vpop.f32.mrb[57].mxu0 }
 0x2bd   :  { %v1422_v38 = vadd.f32 %v3033_v16, %v1421_v3 }
 0x2be   :  { %1646 = vst.msk [vmem:[%s3362_s7 + $0xc8] sm:$0xff] %vm1620_vm1, %v1427_v49 }
 0x2bf   :  { %1645 = vst.msk [vmem:[%s3362_s7 + $0xc0] sm:$0xff] %vm1620_vm1, %v1422_v38  ;;  %v2280_v4 = vpop.f32.mrb[58].mxu0 }
 0x2c0   :  { %v1437_v2 = vadd.f32 %v2280_v4, %v3033_v16  ;;  %v1431_v5 = vpop.f32.mrb[59].mxu0 }
 0x2c1   :  { %v1432_v48 = vadd.f32 %v3033_v16, %v1431_v5 }
 0x2c2   :  { %1648 = vst.msk [vmem:[%s3362_s7 + $0xd8] sm:$0xff] %vm1620_vm1, %v1437_v2 }
 0x2c3   :  { %1647 = vst.msk [vmem:[%s3362_s7 + $0xd0] sm:$0xff] %vm1620_vm1, %v1432_v48  ;;  %v2283_v6 = vpop.f32.mrb[60].mxu0 }
 0x2c4   :  { %v1447_v54 = vadd.f32 %v2283_v6, %v3033_v16  ;;  %v1441_v11 = vpop.f32.mrb[61].mxu0 }
 0x2c5   :  { %v1442_v0 = vadd.f32 %v3033_v16, %v1441_v11 }
 0x2c6   :  { %1650 = vst.msk [vmem:[%s3362_s7 + $0xe8] sm:$0xff] %vm1620_vm1, %v1447_v54 }
 0x2c7   :  { %1649 = vst.msk [vmem:[%s3362_s7 + $0xe0] sm:$0xff] %vm1620_vm1, %v1442_v0  ;;  %v2286_v14 = vpop.f32.mrb[62].mxu0 }
 0x2c8   :  { %v1457_v15 = vadd.f32 %v2286_v14, %v3033_v16  ;;  %v1451_v10 = vpop.f32.mrb[63].mxu0 }
 0x2c9   :  { %v1452_v19 = vadd.f32 %v3033_v16, %v1451_v10 }
 0x2ca   :  { %1652 = vst.msk [vmem:[%s3362_s7 + $0xf8] sm:$0xff] %vm1620_vm1, %v1457_v15 }
 0x2cb   :  { %1651 = vst.msk [vmem:[%s3362_s7 + $0xf0] sm:$0xff] %vm1620_vm1, %v1452_v19  ;;  %v2289_v51 = vpop.f32.mrb[64].mxu0 }
 0x2cc   :  { %v1467_v21 = vadd.f32 %v2289_v51, %v3033_v16  ;;  %v1461_v25 = vpop.f32.mrb[65].mxu0 }
 0x2cd   :  { %v1462_v13 = vadd.f32 %v3033_v16, %v1461_v25 }
 0x2ce   :  { %1654 = vst.msk [vmem:[%s3362_s7 + $0x108] sm:$0xff] %vm1620_vm1, %v1467_v21 }
 0x2cf   :  { %1653 = vst.msk [vmem:[%s3362_s7 + $0x100] sm:$0xff] %vm1620_vm1, %v1462_v13  ;;  %v2292_v1 = vpop.f32.mrb[66].mxu0 }
 0x2d0   :  { %v1477_v22 = vadd.f32 %v2292_v1, %v3033_v16  ;;  %v1471_v24 = vpop.f32.mrb[67].mxu0 }
 0x2d1   :  { %v1472_v12 = vadd.f32 %v3033_v16, %v1471_v24 }
 0x2d2   :  { %1656 = vst.msk [vmem:[%s3362_s7 + $0x118] sm:$0xff] %vm1620_vm1, %v1477_v22 }
 0x2d3   :  { %1655 = vst.msk [vmem:[%s3362_s7 + $0x110] sm:$0xff] %vm1620_vm1, %v1472_v12  ;;  %v2295_v62 = vpop.f32.mrb[68].mxu0 }
 0x2d4   :  { %v1487_v26 = vadd.f32 %v2295_v62, %v3033_v16  ;;  %v1481_v27 = vpop.f32.mrb[69].mxu0 }
 0x2d5   :  { %v1482_v30 = vadd.f32 %v3033_v16, %v1481_v27 }
 0x2d6   :  { %1658 = vst.msk [vmem:[%s3362_s7 + $0x128] sm:$0xff] %vm1620_vm1, %v1487_v26 }
 0x2d7   :  { %1657 = vst.msk [vmem:[%s3362_s7 + $0x120] sm:$0xff] %vm1620_vm1, %v1482_v30  ;;  %v2298_v23 = vpop.f32.mrb[70].mxu0 }
 0x2d8   :  { %v1497_v31 = vadd.f32 %v2298_v23, %v3033_v16  ;;  %v1491_v9 = vpop.f32.mrb[71].mxu0 }
 0x2d9   :  { %v1492_v33 = vadd.f32 %v3033_v16, %v1491_v9 }
 0x2da   :  { %1660 = vst.msk [vmem:[%s3362_s7 + $0x138] sm:$0xff] %vm1620_vm1, %v1497_v31 }
 0x2db   :  { %1659 = vst.msk [vmem:[%s3362_s7 + $0x130] sm:$0xff] %vm1620_vm1, %v1492_v33  ;;  %v2301_v35 = vpop.f32.mrb[72].mxu0 }
 0x2dc   :  { %v1507_v34 = vadd.f32 %v2301_v35, %v3033_v16  ;;  %v1501_v20 = vpop.f32.mrb[73].mxu0 }
 0x2dd   :  { %v1502_v36 = vadd.f32 %v3033_v16, %v1501_v20 }
 0x2de   :  { %1662 = vst.msk [vmem:[%s3362_s7 + $0x148] sm:$0xff] %vm1620_vm1, %v1507_v34 }
 0x2df   :  { %1661 = vst.msk [vmem:[%s3362_s7 + $0x140] sm:$0xff] %vm1620_vm1, %v1502_v36  ;;  %v2304_v44 = vpop.f32.mrb[74].mxu0 }
 0x2e0   :  { %v1517_v37 = vadd.f32 %v2304_v44, %v3033_v16  ;;  %v1511_v32 = vpop.f32.mrb[75].mxu0 }
 0x2e1   :  { %v1512_v40 = vadd.f32 %v3033_v16, %v1511_v32 }
 0x2e2   :  { %1664 = vst.msk [vmem:[%s3362_s7 + $0x158] sm:$0xff] %vm1620_vm1, %v1517_v37 }
 0x2e3   :  { %1663 = vst.msk [vmem:[%s3362_s7 + $0x150] sm:$0xff] %vm1620_vm1, %v1512_v40  ;;  %v2307_v53 = vpop.f32.mrb[76].mxu0 }
 0x2e4   :  { %v1527_v41 = vadd.f32 %v2307_v53, %v3033_v16  ;;  %v1521_v43 = vpop.f32.mrb[77].mxu0 }
 0x2e5   :  { %v1522_v42 = vadd.f32 %v3033_v16, %v1521_v43 }
 0x2e6   :  { %1666 = vst.msk [vmem:[%s3362_s7 + $0x168] sm:$0xff] %vm1620_vm1, %v1527_v41 }
 0x2e7   :  { %1665 = vst.msk [vmem:[%s3362_s7 + $0x160] sm:$0xff] %vm1620_vm1, %v1522_v42  ;;  %v2310_v63 = vpop.f32.mrb[78].mxu0 }
 0x2e8   :  { %v1537_v45 = vadd.f32 %v2310_v63, %v3033_v16  ;;  %v1531_v52 = vpop.f32.mrb[79].mxu0 }
 0x2e9   :  { %v1532_v46 = vadd.f32 %v3033_v16, %v1531_v52 }
 0x2ea   :  { %1668 = vst.msk [vmem:[%s3362_s7 + $0x178] sm:$0xff] %vm1620_vm1, %v1537_v45 }
 0x2eb   :  { %1667 = vst.msk [vmem:[%s3362_s7 + $0x170] sm:$0xff] %vm1620_vm1, %v1532_v46  ;;  %v2313_v8 = vpop.f32.mrb[80].mxu0 }
 0x2ec   :  { %v1547_v47 = vadd.f32 %v2313_v8, %v3033_v16  ;;  %v1541_v61 = vpop.f32.mrb[81].mxu0 }
 0x2ed   :  { %v1542_v50 = vadd.f32 %v3033_v16, %v1541_v61 }
 0x2ee   :  { %1670 = vst.msk [vmem:[%s3362_s7 + $0x188] sm:$0xff] %vm1620_vm1, %v1547_v47 }
 0x2ef   :  { %1669 = vst.msk [vmem:[%s3362_s7 + $0x180] sm:$0xff] %vm1620_vm1, %v1542_v50  ;;  %v2316_v18 = vpop.f32.mrb[82].mxu0 }
 0x2f0   :  { %v1557_v55 = vadd.f32 %v2316_v18, %v3033_v16  ;;  %v1551_v7 = vpop.f32.mrb[83].mxu0 }
 0x2f1   :  { %v1552_v56 = vadd.f32 %v3033_v16, %v1551_v7 }
 0x2f2   :  { %1672 = vst.msk [vmem:[%s3362_s7 + $0x198] sm:$0xff] %vm1620_vm1, %v1557_v55 }
 0x2f3   :  { %1671 = vst.msk [vmem:[%s3362_s7 + $0x190] sm:$0xff] %vm1620_vm1, %v1552_v56  ;;  %v2319_v29 = vpop.f32.mrb[84].mxu0 }
 0x2f4   :  { %v1567_v57 = vadd.f32 %v2319_v29, %v3033_v16  ;;  %v1561_v17 = vpop.f32.mrb[85].mxu0 }
 0x2f5   :  { %v1562_v58 = vadd.f32 %v3033_v16, %v1561_v17 }
 0x2f6   :  { %1674 = vst.msk [vmem:[%s3362_s7 + $0x1a8] sm:$0xff] %vm1620_vm1, %v1567_v57 }
 0x2f7   :  { %1673 = vst.msk [vmem:[%s3362_s7 + $0x1a0] sm:$0xff] %vm1620_vm1, %v1562_v58  ;;  %v2322_v39 = vpop.f32.mrb[86].mxu0 }
 0x2f8   :  { %v1577_v59 = vadd.f32 %v2322_v39, %v3033_v16  ;;  %v1571_v28 = vpop.f32.mrb[87].mxu0 }
 0x2f9   :  { %v1572_v60 = vadd.f32 %v3033_v16, %v1571_v28 }
 0x2fa   :  { %1676 = vst.msk [vmem:[%s3362_s7 + $0x1b8] sm:$0xff] %vm1620_vm1, %v1577_v59 }
 0x2fb   :  { %1675 = vst.msk [vmem:[%s3362_s7 + $0x1b0] sm:$0xff] %vm1620_vm1, %v1572_v60  ;;  %v2325_v49 = vpop.f32.mrb[88].mxu0 }
 0x2fc   :  { %v1587_v3 = vadd.f32 %v2325_v49, %v3033_v16  ;;  %v1581_v38 = vpop.f32.mrb[89].mxu0 }
 0x2fd   :  { %v1582_v4 = vadd.f32 %v3033_v16, %v1581_v38 }
 0x2fe   :  { %1678 = vst.msk [vmem:[%s3362_s7 + $0x1c8] sm:$0xff] %vm1620_vm1, %v1587_v3 }
 0x2ff   :  { %1677 = vst.msk [vmem:[%s3362_s7 + $0x1c0] sm:$0xff] %vm1620_vm1, %v1582_v4  ;;  %v2328_v2 = vpop.f32.mrb[90].mxu0 }
 0x300   :  { %v1597_v5 = vadd.f32 %v2328_v2, %v3033_v16  ;;  %v1591_v48 = vpop.f32.mrb[91].mxu0 }
 0x301   :  { %v1592_v6 = vadd.f32 %v3033_v16, %v1591_v48 }
 0x302   :  { %1680 = vst.msk [vmem:[%s3362_s7 + $0x1d8] sm:$0xff] %vm1620_vm1, %v1597_v5 }
 0x303   :  { %1679 = vst.msk [vmem:[%s3362_s7 + $0x1d0] sm:$0xff] %vm1620_vm1, %v1592_v6  ;;  %v2331_v54 = vpop.f32.mrb[92].mxu0 }
 0x304   :  { %v1607_v11 = vadd.f32 %v2331_v54, %v3033_v16  ;;  %v1601_v0 = vpop.f32.mrb[93].mxu0 }
 0x305   :  { %v1602_v14 = vadd.f32 %v3033_v16, %v1601_v0 }
 0x306   :  { %1682 = vst.msk [vmem:[%s3362_s7 + $0x1e8] sm:$0xff] %vm1620_vm1, %v1607_v11 }
 0x307   :  { %1681 = vst.msk [vmem:[%s3362_s7 + $0x1e0] sm:$0xff] %vm1620_vm1, %v1602_v14  ;;  %v2334_v15 = vpop.f32.mrb[94].mxu0 }
 0x308   :  { %v1617_v10 = vadd.f32 %v2334_v15, %v3033_v16  ;;  %v1611_v19 = vpop.f32.mrb[95].mxu0 }
 0x309   :  { %v1612_v51 = vadd.f32 %v3033_v16, %v1611_v19 }
 0x30a   :  { %1684 = vst.msk [vmem:[%s3362_s7 + $0x1f8] sm:$0xff] %vm1620_vm1, %v1617_v10 }
 0x30b   :  { %1683 = vst.msk [vmem:[%s3362_s7 + $0x1f0] sm:$0xff] %vm1620_vm1, %v1612_v51 }

</bundles_post_ra>
